<compile_context>
chip_gen: v6e
topology: v6e:2x2x1
jax: 0.10.0
libtpu: 0.0.40
codegen_flags: <defaults>
</compile_context>

<pallas_src>
import jax
import jax.numpy as jnp
from jax.experimental import pallas as pl
from jax.experimental.pallas import tpu as pltpu

HIDDEN = 256


def critic_kernel(x_ref, w1_ref, w2_ref, b12_ref, w3_ref, b3_ref, q_ref):
    # x_ref  : [obs_dim, bt]   observations, pre-transposed (batch on the 128-lane axis)
    # w1_ref : [256, obs_dim]  PyTorch [out, in] layout (resident)
    # w2_ref : [256, 256]
    # b12_ref: [256, 2]        column 0 = b1, column 1 = b2 (packed, resident)
    # w3_ref : [1, 256]        output-layer weight as a row (M=1 MXU matmul)
    # b3_ref : [1, 1]          (f32)
    # q_ref  : [1, 1, bt]      lane-dense output row for this tile
    cdt = w1_ref.dtype                       # compute / epilogue dtype (f32, or bf16 on v6e/v7x)
    b12 = b12_ref[...]                       # [256, 2]
    b1 = b12[:, 0:1]                         # [256, 1] -> broadcasts over batch lanes
    b2 = b12[:, 1:2]

    # fc1: [256, obs_dim] @ [obs_dim, bt] -> f32 accumulator [256, bt].
    h1 = jnp.dot(w1_ref[...], x_ref[...], preferred_element_type=jnp.float32)
    h1 = jnp.maximum(h1.astype(cdt) + b1, 0.0)          # epilogue in compute dtype

    # fc2: [256, 256] @ [256, bt] -> f32 accumulator [256, bt].
    h2 = jnp.dot(w2_ref[...], h1, preferred_element_type=jnp.float32)
    h2 = jnp.maximum(h2.astype(cdt) + b2, 0.0)

    # out layer (256 -> 1): M=1 MXU matmul -> [1, bt]; keeps the VALU/XLU free.
    q = jnp.dot(w3_ref[...], h2, preferred_element_type=jnp.float32)
    q_ref[0] = (q + b3_ref[...]).astype(q_ref.dtype)


def _round_up(n: int, m: int) -> int:
    return ((n + m - 1) // m) * m


def _choose_batch_tile(B: int, batch_tile: int) -> int:
    # >= 256 so fc2's N (batch-on-lanes) fills the 256-wide MXU on v6e/v7x;
    # multiple of 128 lanes; never larger than the padded batch.
    bt = max(256, min(_round_up(batch_tile, 128), _round_up(B, 256)))
    # v7x megacore: prefer >= 2 grid steps whenever both halves can still be >= 256 rows,
    # so ("parallel",) has something to shard across the two TensorCores.
    if pl.cdiv(B, bt) < 2 and B >= 2 * 256:
        bt = max(256, _round_up(pl.cdiv(B, 2), 128))
    return bt


def critic_forward(x, params, *, batch_tile=1024, compute_dtype=jnp.float32):
    """x: [B, obs_dim] float32; params in PyTorch layout -> q: [B] float32.

    compute_dtype=jnp.bfloat16 enables the MXU fast path + bf16 epilogues (recommended on
    v6e/v7x); keep jnp.float32 on v5e or when full-precision parity is required.
    """
    w1, b1, w2, b2, w3, b3 = params
    B, obs_dim = x.shape

    bt = _choose_batch_tile(B, batch_tile)
    num_tiles = pl.cdiv(B, bt)
    b_pad = num_tiles * bt

    # Wrapper-side transpose: [obs_dim, B] gives the kernel a lane-dense, contiguous x tile
    # and lets fc1 be a plain jnp.dot (no in-kernel relayout).  Pad ragged batch with zeros.
    x_k = x.astype(compute_dtype).T                      # [obs_dim, B]
    if b_pad != B:
        x_k = jnp.pad(x_k, ((0, 0), (0, b_pad - B)))

    # Kernel-side param layouts / dtypes (one-time, outside the kernel).
    w1_k = w1.astype(compute_dtype)                      # [256, obs_dim]
    w2_k = w2.astype(compute_dtype)                      # [256, 256]
    b12_k = jnp.stack([b1, b2], axis=1).astype(compute_dtype)   # [256, 2]
    w3_k = w3.reshape(1, HIDDEN).astype(compute_dtype)   # output weight as a row
    b3_k = b3.reshape(1, 1).astype(jnp.float32)

    q3 = pl.pallas_call(
        critic_kernel,
        out_shape=jax.ShapeDtypeStruct((num_tiles, 1, bt), jnp.float32),
        grid_spec=pltpu.PrefetchScalarGridSpec(
            num_scalar_prefetch=0,
            grid=(num_tiles,),
            in_specs=[
                pl.BlockSpec((obs_dim, bt), lambda i: (0, i)),        # x tile (batch-sliced)
                pl.BlockSpec((HIDDEN, obs_dim), lambda i: (0, 0)),    # w1 (resident)
                pl.BlockSpec((HIDDEN, HIDDEN), lambda i: (0, 0)),     # w2 (resident)
                pl.BlockSpec((HIDDEN, 2), lambda i: (0, 0)),          # packed b1|b2
                pl.BlockSpec((1, HIDDEN), lambda i: (0, 0)),          # w3 row
                pl.BlockSpec((1, 1), lambda i: (0, 0)),               # b3
            ],
            out_specs=pl.BlockSpec((1, 1, bt), lambda i: (i, 0, 0)),  # lane-dense q row
        ),
        compiler_params=pltpu.CompilerParams(
            # Batch tiles are independent -> shard across TensorCores (v7x megacore).
            dimension_semantics=("parallel",),
        ),
    )(x_k, w1_k, w2_k, b12_k, w3_k, b3_k)

    # [num_tiles, 1, bt] -> [b_pad] -> strip padding.  Equivalent of torch.squeeze(q, -1).
    return q3.reshape(b_pad)[:B]


def init_params(key, obs_dim):
    """PyTorch-style init, PyTorch layout: W [out, in] ~ U(+-1/sqrt(fan_in)), b [out]."""
    k1, k2, k3, k4, k5, k6 = jax.random.split(key, 6)

    def lin(kw, kb, fan_in, fan_out):
        bound = 1.0 / float(fan_in) ** 0.5
        w = jax.random.uniform(kw, (fan_out, fan_in), jnp.float32, -bound, bound)
        b = jax.random.uniform(kb, (fan_out,), jnp.float32, -bound, bound)
        return w, b

    w1, b1 = lin(k1, k2, obs_dim, HIDDEN)
    w2, b2 = lin(k3, k4, HIDDEN, HIDDEN)
    w3, b3 = lin(k5, k6, HIDDEN, 1)
    return (w1, b1, w2, b2, w3, b3)


def _numpy_reference(x, params):
    import numpy as np
    w1, b1, w2, b2, w3, b3 = [np.asarray(p, dtype=np.float64) for p in params]
    xn = np.asarray(x, dtype=np.float64)
    h1 = np.maximum(xn @ w1.T + b1, 0.0)
    h2 = np.maximum(h1 @ w2.T + b2, 0.0)
    return (h2 @ w3.T + b3).squeeze(-1)


if __name__ == "__main__":
    import numpy as np

    key = jax.random.PRNGKey(0)
    k_param, k_x1, k_x2 = jax.random.split(key, 3)

    obs_dim = 16
    params = init_params(k_param, obs_dim)

    # Case 1: small batch, not a multiple of 128 -> single 256-row tile with ragged padding.
    batch1 = 200
    x1 = jax.random.normal(k_x1, (batch1, obs_dim), jnp.float32)
    q1 = jax.block_until_ready(critic_forward(x1, params))                       # f32 path
    q1_bf16 = jax.block_until_ready(
        critic_forward(x1, params, compute_dtype=jnp.bfloat16))                  # bf16 path
    q1_ref = _numpy_reference(x1, params)
    assert q1.shape == (batch1,) and q1_bf16.shape == (batch1,)
    assert np.allclose(np.asarray(q1, np.float64), q1_ref, atol=1e-2, rtol=1e-2)
    assert np.allclose(np.asarray(q1_bf16, np.float64), q1_ref, atol=1e-1, rtol=1e-1)

    # Case 2: medium batch -> tile shrinks so the grid has >= 2 steps (v7x megacore path).
    batch2 = 600
    x2 = jax.random.normal(k_x2, (batch2, obs_dim), jnp.float32)
    q2 = jax.block_until_ready(critic_forward(x2, params))
    q2_ref = _numpy_reference(x2, params)
    assert q2.shape == (batch2,)
    assert np.allclose(np.asarray(q2, np.float64), q2_ref, atol=1e-2, rtol=1e-2)

    print("KERNEL_OK")
</pallas_src>

<mosaic_0001>
module attributes {stable_mosaic.version = 11 : i64} {
  func.func @critic_kernel(%arg0: i32, %arg1: memref<16x256xf32, #tpu.memory_space<vmem>>, %arg2: memref<256x16xf32, #tpu.memory_space<vmem>>, %arg3: memref<256x256xf32, #tpu.memory_space<vmem>>, %arg4: memref<256x2xf32, #tpu.memory_space<vmem>>, %arg5: memref<1x256xf32, #tpu.memory_space<vmem>>, %arg6: memref<1x1xf32, #tpu.memory_space<vmem>>, %arg7: memref<1x1x256xf32, #tpu.memory_space<vmem>>) attributes {dimension_semantics = [#tpu.dimension_semantics<parallel>], iteration_bounds = array<i64: 1>, scalar_prefetch = 0 : i64, scratch_operands = 0 : i64, tpu.core_type = #tpu.core_type<tc>, window_params = [{transform_indices = @transform_0, window_bounds = array<i64: 16, 256>}, {pipeline_mode = #tpu.pipeline_mode<synchronous>, transform_indices = @transform_1, window_bounds = array<i64: 256, 16>}, {pipeline_mode = #tpu.pipeline_mode<synchronous>, transform_indices = @transform_2, window_bounds = array<i64: 256, 256>}, {pipeline_mode = #tpu.pipeline_mode<synchronous>, transform_indices = @transform_3, window_bounds = array<i64: 256, 2>}, {pipeline_mode = #tpu.pipeline_mode<synchronous>, transform_indices = @transform_4, window_bounds = array<i64: 1, 256>}, {pipeline_mode = #tpu.pipeline_mode<synchronous>, transform_indices = @transform_5, window_bounds = array<i64: 1, 1>}, {transform_indices = @transform_6, window_bounds = array<i64: 1, 1, 256>}]} {
    %c0 = arith.constant 0 : index
    %c0_0 = arith.constant 0 : index
    %0 = vector.load %arg4[%c0, %c0_0] : memref<256x2xf32, #tpu.memory_space<vmem>>, vector<256x2xf32>
    %1 = vector.extract_strided_slice %0 {offsets = [0, 0], sizes = [256, 1], strides = [1, 1]} : vector<256x2xf32> to vector<256x1xf32>
    %2 = vector.extract_strided_slice %0 {offsets = [0, 1], sizes = [256, 1], strides = [1, 1]} : vector<256x2xf32> to vector<256x1xf32>
    %c0_1 = arith.constant 0 : index
    %c0_2 = arith.constant 0 : index
    %3 = vector.load %arg2[%c0_1, %c0_2] : memref<256x16xf32, #tpu.memory_space<vmem>>, vector<256x16xf32>
    %c0_3 = arith.constant 0 : index
    %c0_4 = arith.constant 0 : index
    %4 = vector.load %arg1[%c0_3, %c0_4] : memref<16x256xf32, #tpu.memory_space<vmem>>, vector<16x256xf32>
    %cst = arith.constant dense<0.000000e+00> : vector<256x256xf32>
    %5 = tpu.matmul %3, %4, %cst {dimension_numbers = #tpu.dot_dimension_numbers<[1], [0], [0], [1], [0, 0, 1, 1], [], []>} : vector<256x16xf32>, vector<16x256xf32>, vector<256x256xf32> -> vector<256x256xf32>
    %6 = vector.broadcast %1 : vector<256x1xf32> to vector<256x256xf32>
    %7 = arith.addf %5, %6 : vector<256x256xf32>
    %cst_5 = arith.constant 0.000000e+00 : f32
    %8 = vector.broadcast %cst_5 : f32 to vector<256x256xf32>
    %9 = arith.maximumf %7, %8 : vector<256x256xf32>
    %c0_6 = arith.constant 0 : index
    %c0_7 = arith.constant 0 : index
    %10 = vector.load %arg3[%c0_6, %c0_7] : memref<256x256xf32, #tpu.memory_space<vmem>>, vector<256x256xf32>
    %cst_8 = arith.constant dense<0.000000e+00> : vector<256x256xf32>
    %11 = tpu.matmul %10, %9, %cst_8 {dimension_numbers = #tpu.dot_dimension_numbers<[1], [0], [0], [1], [0, 0, 1, 1], [], []>} : vector<256x256xf32>, vector<256x256xf32>, vector<256x256xf32> -> vector<256x256xf32>
    %12 = vector.broadcast %2 : vector<256x1xf32> to vector<256x256xf32>
    %13 = arith.addf %11, %12 : vector<256x256xf32>
    %cst_9 = arith.constant 0.000000e+00 : f32
    %14 = vector.broadcast %cst_9 : f32 to vector<256x256xf32>
    %15 = arith.maximumf %13, %14 : vector<256x256xf32>
    %c0_10 = arith.constant 0 : index
    %c0_11 = arith.constant 0 : index
    %16 = vector.load %arg5[%c0_10, %c0_11] : memref<1x256xf32, #tpu.memory_space<vmem>>, vector<1x256xf32>
    %cst_12 = arith.constant dense<0.000000e+00> : vector<1x256xf32>
    %17 = tpu.matmul %16, %15, %cst_12 {dimension_numbers = #tpu.dot_dimension_numbers<[1], [0], [0], [1], [0, 0, 1, 1], [], []>} : vector<1x256xf32>, vector<256x256xf32>, vector<1x256xf32> -> vector<1x256xf32>
    %c0_13 = arith.constant 0 : index
    %c0_14 = arith.constant 0 : index
    %18 = vector.load %arg6[%c0_13, %c0_14] : memref<1x1xf32, #tpu.memory_space<vmem>>, vector<1x1xf32>
    %19 = vector.broadcast %18 : vector<1x1xf32> to vector<1x256xf32>
    %20 = arith.addf %17, %19 : vector<1x256xf32>
    %c0_15 = arith.constant 0 : index
    %c0_16 = arith.constant 0 : index
    %c0_17 = arith.constant 0 : index
    %21 = vector.load %arg7[%c0_15, %c0_16, %c0_17] : memref<1x1x256xf32, #tpu.memory_space<vmem>>, vector<1x1x256xf32>
    %22 = vector.shape_cast %21 : vector<1x1x256xf32> to vector<1x256xf32>
    %23 = vector.shape_cast %20 : vector<1x256xf32> to vector<1x1x256xf32>
    tpu.vector_store %arg7[%c0_15, %c0_16, %c0_17], %23 {strides = array<i32>} : memref<1x1x256xf32, #tpu.memory_space<vmem>>, vector<1x1x256xf32>,
    return
  }
  func.func @transform_0(%arg0: i32) -> (i32, i32) {
    %c0_i32 = arith.constant 0 : i32
    %c0_i32_0 = arith.constant 0 : i32
    return %c0_i32, %arg0 : i32, i32
  }
  func.func @transform_1(%arg0: i32) -> (i32, i32) {
    %c0_i32 = arith.constant 0 : i32
    %c0_i32_0 = arith.constant 0 : i32
    %c0_i32_1 = arith.constant 0 : i32
    return %c0_i32, %c0_i32_0 : i32, i32
  }
  func.func @transform_2(%arg0: i32) -> (i32, i32) {
    %c0_i32 = arith.constant 0 : i32
    %c0_i32_0 = arith.constant 0 : i32
    %c0_i32_1 = arith.constant 0 : i32
    return %c0_i32, %c0_i32_0 : i32, i32
  }
  func.func @transform_3(%arg0: i32) -> (i32, i32) {
    %c0_i32 = arith.constant 0 : i32
    %c0_i32_0 = arith.constant 0 : i32
    %c0_i32_1 = arith.constant 0 : i32
    return %c0_i32, %c0_i32_0 : i32, i32
  }
  func.func @transform_4(%arg0: i32) -> (i32, i32) {
    %c0_i32 = arith.constant 0 : i32
    %c0_i32_0 = arith.constant 0 : i32
    %c0_i32_1 = arith.constant 0 : i32
    return %c0_i32, %c0_i32_0 : i32, i32
  }
  func.func @transform_5(%arg0: i32) -> (i32, i32) {
    %c0_i32 = arith.constant 0 : i32
    %c0_i32_0 = arith.constant 0 : i32
    %c0_i32_1 = arith.constant 0 : i32
    return %c0_i32, %c0_i32_0 : i32, i32
  }
  func.func @transform_6(%arg0: i32) -> (i32, i32, i32) {
    %c0_i32 = arith.constant 0 : i32
    %c0_i32_0 = arith.constant 0 : i32
    %c0_i32_1 = arith.constant 0 : i32
    return %arg0, %c0_i32, %c0_i32_0 : i32, i32, i32
  }
}

</mosaic_0001>

<bundles_post_ra>
// kernel: tpu_custom_call.1
= control target key start
LH: loop header
LB: loop body
LE: loop exit
PB: predicated region body
PF: predicated region fallthrough
CT: control target
= control target key end

     0   :  { %s2251_s0 = inlined_call_operand.vmem [shape: f32[16,256], index: 0, kind: input, shape index: {}]   ;;  %s2252_s1 = inlined_call_operand.vmem [shape: f32[256,16], index: 1, kind: input, shape index: {}]   ;;  %s2253_s2 = inlined_call_operand.vmem [shape: f32[256,256], index: 2, kind: input, shape index: {}]   ;;  %s2254_s3 = inlined_call_operand.vmem [shape: f32[256,2], index: 3, kind: input, shape index: {}]   ;;  %s2255_s4 = inlined_call_operand.vmem [shape: f32[1,256], index: 4, kind: input, shape index: {}]   ;;  %s2256_s5 = inlined_call_operand.<no memory space> [shape: f32[1,1], index: 5, kind: input, shape index: {}]   ;;  %s2257_s6 = inlined_call_operand.hbm [shape: f32[1,1,256], index: 6, kind: output, shape index: {}]  }
   0x1   :  { %v11_v0 = vstv %s2256_s5 }
   0x2   :  { %12 = vst [vmem:[#allocation2] sm:$0x1] %v11_v0 }
   0x3   :  { %v93_v1 = vld [vmem:[%s2251_s0 + $0x18] sm:$0xff]  ;;  %v92_v2 = vld [vmem:[%s2251_s0 + $0x10] sm:$0xff]  ;;  %v91_v3 = vld [vmem:[%s2251_s0 + $0x8] sm:$0xff]  ;;  %v1380_v5 = vmov 0.0   ;;  %vm254_vm0 = vcmask 130048   ;;  %v2258_v7 = vmov 0  }
   0x4   :  { %379 = vmatprep.subr.mxu0 %v93_v1  ;;  %v90_v4 = vld [vmem:[%s2251_s0] sm:$0xff]  ;;  %415 = vmatprep.mubr.f32.mxu0 %v1380_v5  ;;  %v1445_v8 = vld [vmem:[%s2254_s3 + $0x68] sm:$0xff]  ;;  %v1450_v9 = vld [vmem:[%s2254_s3 + $0x78] sm:$0xff] }
   0x5   :  { %380 = vmatpush1.msra.mxu0 %v92_v2  ;;  %v58_v6 = vld [vmem:[%s2252_s1] sm:$0xff]  ;;  %1353 = vset.pattern.permute.xlu1 %v2258_v7  ;;  %v59_v10 = vld [vmem:[%s2252_s1 + $0x8] sm:$0xff]  ;;  %v1466_v12 = vld [vmem:[%s2254_s3 + $0x70] sm:$0xff] }
   0x6   :  { %381 = vmatprep.subr.mxu0 %v91_v3  ;;  %1352 = vset.pattern.permute.xlu0 %v2258_v7  ;;  %v1461_v11 = vld [vmem:[%s2254_s3 + $0x60] sm:$0xff]  ;;  %v60_v13 = vld [vmem:[%s2252_s1 + $0x10] sm:$0xff]  ;;  %v1483_v15 = vld [vmem:[%s2254_s3 + $0x58] sm:$0xff] }
   0x7   :  { %382 = vmatpush1.msra.mxu0 %v90_v4  ;;  %161 = vperm.xlu1 %1353, %v1445_v8   ;;  %v1478_v14 = vld [vmem:[%s2254_s3 + $0x50] sm:$0xff]  ;;  %v61_v16 = vld [vmem:[%s2252_s1 + $0x18] sm:$0xff]  ;;  %v1495_v17 = vld [vmem:[%s2254_s3 + $0x40] sm:$0xff] }
   0x8   :  { %1315 = vmatmul.mubr.msk.f32.vlgmr.msra.gmra.mxu0 %vm254_vm0, %v58_v6  ;;  %171 = vperm.xlu0 %1352, %v1450_v9   ;;  %v1500_v18 = vld [vmem:[%s2254_s3 + $0x48] sm:$0xff]  ;;  %v62_v19 = vld [vmem:[%s2252_s1 + $0x20] sm:$0xff]  ;;  %v1512_v20 = vld [vmem:[%s2254_s3 + $0x30] sm:$0xff] }
   0x9   :  { %421 = vmatprep.mubr.f32.mxu0 %v1380_v5  ;;  %v1517_v21 = vld [vmem:[%s2254_s3 + $0x38] sm:$0xff]  ;;  %v63_v22 = vld [vmem:[%s2252_s1 + $0x28] sm:$0xff] }
   0xb   :  { %156 = vperm.xlu1 %1353, %v1461_v11  }
   0xc   :  { %1316 = vmatmul.mubr.msk.f32.gmra.mxu0 %vm254_vm0, %v59_v10  ;;  %166 = vperm.xlu0 %1352, %v1466_v12  }
   0xd   :  { %427 = vmatprep.mubr.f32.mxu0 %v1380_v5 }
   0xf   :  { %146 = vperm.xlu1 %1353, %v1478_v14  }
  0x10   :  { %1317 = vmatmul.mubr.msk.f32.gmra.mxu0 %vm254_vm0, %v60_v13  ;;  %151 = vperm.xlu0 %1352, %v1483_v15  }
  0x11   :  { %433 = vmatprep.mubr.f32.mxu0 %v1380_v5 }
  0x13   :  { %136 = vperm.xlu1 %1353, %v1495_v17  }
  0x14   :  { %1318 = vmatmul.mubr.msk.f32.gmra.mxu0 %vm254_vm0, %v61_v16  ;;  %141 = vperm.xlu0 %1352, %v1500_v18  }
  0x15   :  { %439 = vmatprep.mubr.f32.mxu0 %v1380_v5 }
  0x17   :  { %126 = vperm.xlu1 %1353, %v1512_v20  }
  0x18   :  { %1319 = vmatmul.mubr.msk.f32.gmra.mxu0 %vm254_vm0, %v62_v19 }
  0x19   :  { %445 = vmatprep.mubr.f32.mxu0 %v1380_v5 }
  0x1a   :  { %13 = vsyncpa [#allocation4], 0  ;;  %131 = vperm.xlu0 %1352, %v1517_v21   ;;  %v1529_v23 = vld [vmem:[%s2254_s3 + $0x20] sm:$0xff]  ;;  %v1534_v24 = vld [vmem:[%s2254_s3 + $0x28] sm:$0xff] }
  0x1b   :  { %2282 = vst [vmem:[#allocation6_spill] sm:$0xff] %v1529_v23  ;;  %2283 = vst [vmem:[#allocation7_spill] sm:$0xff] %v1534_v24  ;;  %v64_v25 = vld [vmem:[%s2252_s1 + $0x30] sm:$0xff]  ;;  %116 = vperm.xlu1 %1353, %v1529_v23   ;;  %v1551_v27 = vld [vmem:[%s2254_s3 + $0x18] sm:$0xff] }
  0x1c   :  { %1320 = vmatmul.mubr.msk.f32.gmra.mxu0 %vm254_vm0, %v63_v22  ;;  %v1546_v26 = vld [vmem:[%s2254_s3 + $0x10] sm:$0xff]  ;;  %2285 = vst [vmem:[#allocation9_spill] sm:$0xff] %v1551_v27  ;;  %v65_v28 = vld [vmem:[%s2252_s1 + $0x38] sm:$0xff]  ;;  %v1563_v29 = vld [vmem:[%s2254_s3] sm:$0xff] }
  0x1d   :  { %451 = vmatprep.mubr.f32.mxu0 %v1380_v5  ;;  %2284 = vst [vmem:[#allocation8_spill] sm:$0xff] %v1546_v26  ;;  %2286 = vst [vmem:[#allocation10_spill] sm:$0xff] %v1563_v29  ;;  %v1568_v30 = vld [vmem:[%s2254_s3 + $0x8] sm:$0xff]  ;;  %v66_v31 = vld [vmem:[%s2252_s1 + $0x40] sm:$0xff] }
  0x1e   :  { %121 = vperm.xlu0 %1352, %v1534_v24   ;;  %2287 = vst [vmem:[#allocation11_spill] sm:$0xff] %v1568_v30  ;;  %v1580_v32 = vld [vmem:[%s2254_s3 + $0xf0] sm:$0xff]  ;;  %v1585_v33 = vld [vmem:[%s2254_s3 + $0xf8] sm:$0xff]  ;;  %v67_v34 = vld [vmem:[%s2252_s1 + $0x48] sm:$0xff] }
  0x1f   :  { %106 = vperm.xlu1 %1353, %v1546_v26   ;;  %2288 = vst [vmem:[#allocation12_spill] sm:$0xff] %v1580_v32  ;;  %2289 = vst [vmem:[#allocation13_spill] sm:$0xff] %v1585_v33  ;;  %v1597_v35 = vld [vmem:[%s2254_s3 + $0xe0] sm:$0xff]  ;;  %v1602_v36 = vld [vmem:[%s2254_s3 + $0xe8] sm:$0xff] }
  0x20   :  { %1321 = vmatmul.mubr.msk.f32.gmra.mxu0 %vm254_vm0, %v64_v25  ;;  %2290 = vst [vmem:[#allocation14_spill] sm:$0xff] %v1597_v35  ;;  %2291 = vst [vmem:[#allocation15_spill] sm:$0xff] %v1602_v36  ;;  %v68_v37 = vld [vmem:[%s2252_s1 + $0x50] sm:$0xff]  ;;  %v1619_v39 = vld [vmem:[%s2254_s3 + $0xd8] sm:$0xff] }
  0x21   :  { %457 = vmatprep.mubr.f32.mxu0 %v1380_v5  ;;  %v1614_v38 = vld [vmem:[%s2254_s3 + $0xd0] sm:$0xff]  ;;  %2293 = vst [vmem:[#allocation17_spill] sm:$0xff] %v1619_v39  ;;  %v69_v40 = vld [vmem:[%s2252_s1 + $0x58] sm:$0xff]  ;;  %v1631_v41 = vld [vmem:[%s2254_s3 + $0xc0] sm:$0xff] }
  0x22   :  { %111 = vperm.xlu0 %1352, %v1551_v27   ;;  %2292 = vst [vmem:[#allocation16_spill] sm:$0xff] %v1614_v38  ;;  %2294 = vst [vmem:[#allocation18_spill] sm:$0xff] %v1631_v41  ;;  %v1636_v42 = vld [vmem:[%s2254_s3 + $0xc8] sm:$0xff]  ;;  %v70_v43 = vld [vmem:[%s2252_s1 + $0x60] sm:$0xff] }
  0x23   :  { %96 = vperm.xlu1 %1353, %v1563_v29   ;;  %2295 = vst [vmem:[#allocation19_spill] sm:$0xff] %v1636_v42  ;;  %v1648_v44 = vld [vmem:[%s2254_s3 + $0xb0] sm:$0xff]  ;;  %v1653_v45 = vld [vmem:[%s2254_s3 + $0xb8] sm:$0xff]  ;;  %v71_v46 = vld [vmem:[%s2252_s1 + $0x68] sm:$0xff] }
  0x24   :  { %1322 = vmatmul.mubr.msk.f32.gmra.mxu0 %vm254_vm0, %v65_v28  ;;  %2296 = vst [vmem:[#allocation20_spill] sm:$0xff] %v1648_v44  ;;  %2297 = vst [vmem:[#allocation21_spill] sm:$0xff] %v1653_v45  ;;  %v1665_v47 = vld [vmem:[%s2254_s3 + $0xa0] sm:$0xff]  ;;  %v1670_v48 = vld [vmem:[%s2254_s3 + $0xa8] sm:$0xff] }
  0x25   :  { %463 = vmatprep.mubr.f32.mxu0 %v1380_v5  ;;  %2298 = vst [vmem:[#allocation22_spill] sm:$0xff] %v1665_v47  ;;  %2299 = vst [vmem:[#allocation23_spill] sm:$0xff] %v1670_v48  ;;  %v72_v49 = vld [vmem:[%s2252_s1 + $0x70] sm:$0xff]  ;;  %v1687_v51 = vld [vmem:[%s2254_s3 + $0x98] sm:$0xff] }
  0x26   :  { %101 = vperm.xlu0 %1352, %v1568_v30   ;;  %v1682_v50 = vld [vmem:[%s2254_s3 + $0x90] sm:$0xff]  ;;  %2301 = vst [vmem:[#allocation25_spill] sm:$0xff] %v1687_v51  ;;  %v73_v52 = vld [vmem:[%s2252_s1 + $0x78] sm:$0xff]  ;;  %v1699_v53 = vld [vmem:[%s2254_s3 + $0x80] sm:$0xff] }
  0x27   :  { %246 = vperm.xlu1 %1353, %v1580_v32   ;;  %2300 = vst [vmem:[#allocation24_spill] sm:$0xff] %v1682_v50  ;;  %2302 = vst [vmem:[#allocation26_spill] sm:$0xff] %v1699_v53  ;;  %v1704_v54 = vld [vmem:[%s2254_s3 + $0x88] sm:$0xff]  ;;  %v74_v55 = vld [vmem:[%s2252_s1 + $0x80] sm:$0xff] }
  0x28   :  { %1323 = vmatmul.mubr.msk.f32.gmra.mxu0 %vm254_vm0, %v66_v31  ;;  %2303 = vst [vmem:[#allocation27_spill] sm:$0xff] %v1704_v54  ;;  %v75_v56 = vld [vmem:[%s2252_s1 + $0x88] sm:$0xff]  ;;  %v76_v57 = vld [vmem:[%s2252_s1 + $0x90] sm:$0xff]  ;;  %v77_v58 = vld [vmem:[%s2252_s1 + $0x98] sm:$0xff] }
  0x29   :  { %469 = vmatprep.mubr.f32.mxu0 %v1380_v5  ;;  %v78_v59 = vld [vmem:[%s2252_s1 + $0xa0] sm:$0xff]  ;;  %v79_v60 = vld [vmem:[%s2252_s1 + $0xa8] sm:$0xff]  ;;  %v80_v61 = vld [vmem:[%s2252_s1 + $0xb0] sm:$0xff] }
  0x2a   :  { %251 = vperm.xlu0 %1352, %v1585_v33   ;;  %v81_v62 = vld [vmem:[%s2252_s1 + $0xb8] sm:$0xff]  ;;  %v82_v63 = vld [vmem:[%s2252_s1 + $0xc0] sm:$0xff]  ;;  %v83_v0 = vld [vmem:[%s2252_s1 + $0xc8] sm:$0xff] }
  0x2b   :  { %236 = vperm.xlu1 %1353, %v1597_v35   ;;  %v84_v1 = vld [vmem:[%s2252_s1 + $0xd0] sm:$0xff]  ;;  %v85_v2 = vld [vmem:[%s2252_s1 + $0xd8] sm:$0xff]  ;;  %v86_v3 = vld [vmem:[%s2252_s1 + $0xe0] sm:$0xff] }
  0x2c   :  { %1324 = vmatmul.mubr.msk.f32.gmra.mxu0 %vm254_vm0, %v67_v34  ;;  %v87_v4 = vld [vmem:[%s2252_s1 + $0xe8] sm:$0xff]  ;;  %v88_v6 = vld [vmem:[%s2252_s1 + $0xf0] sm:$0xff]  ;;  %v89_v10 = vld [vmem:[%s2252_s1 + $0xf8] sm:$0xff] }
  0x2d   :  { %475 = vmatprep.mubr.f32.mxu0 %v1380_v5 }
  0x2e   :  { %241 = vperm.xlu0 %1352, %v1602_v36  }
  0x2f   :  { %226 = vperm.xlu1 %1353, %v1614_v38  }
  0x30   :  { %1325 = vmatmul.mubr.msk.f32.gmra.mxu0 %vm254_vm0, %v68_v37 }
  0x31   :  { %481 = vmatprep.mubr.f32.mxu0 %v1380_v5 }
  0x32   :  { %231 = vperm.xlu0 %1352, %v1619_v39  }
  0x33   :  { %216 = vperm.xlu1 %1353, %v1631_v41  }
  0x34   :  { %1326 = vmatmul.mubr.msk.f32.gmra.mxu0 %vm254_vm0, %v69_v40 }
  0x35   :  { %487 = vmatprep.mubr.f32.mxu0 %v1380_v5 }
  0x36   :  { %221 = vperm.xlu0 %1352, %v1636_v42  }
  0x37   :  { %206 = vperm.xlu1 %1353, %v1648_v44  }
  0x38   :  { %1327 = vmatmul.mubr.msk.f32.gmra.mxu0 %vm254_vm0, %v70_v43 }
  0x39   :  { %493 = vmatprep.mubr.f32.mxu0 %v1380_v5 }
  0x3a   :  { %211 = vperm.xlu0 %1352, %v1653_v45  }
  0x3b   :  { %196 = vperm.xlu1 %1353, %v1665_v47  }
  0x3c   :  { %1328 = vmatmul.mubr.msk.f32.gmra.mxu0 %vm254_vm0, %v71_v46 }
  0x3d   :  { %499 = vmatprep.mubr.f32.mxu0 %v1380_v5 }
  0x3e   :  { %201 = vperm.xlu0 %1352, %v1670_v48  }
  0x3f   :  { %186 = vperm.xlu1 %1353, %v1682_v50  }
  0x40   :  { %1329 = vmatmul.mubr.msk.f32.gmra.mxu0 %vm254_vm0, %v72_v49 }
  0x41   :  { %505 = vmatprep.mubr.f32.mxu0 %v1380_v5 }
  0x42   :  { %191 = vperm.xlu0 %1352, %v1687_v51  }
  0x43   :  { %176 = vperm.xlu1 %1353, %v1699_v53  }
  0x44   :  { %1330 = vmatmul.mubr.msk.f32.gmra.mxu0 %vm254_vm0, %v73_v52 }
  0x45   :  { %511 = vmatprep.mubr.f32.mxu0 %v1380_v5 }
  0x46   :  { %181 = vperm.xlu0 %1352, %v1704_v54  }
  0x48   :  { %1331 = vmatmul.mubr.msk.f32.gmra.mxu0 %vm254_vm0, %v74_v55 }
  0x49   :  { %517 = vmatprep.mubr.f32.mxu0 %v1380_v5 }
  0x4c   :  { %1332 = vmatmul.mubr.msk.f32.gmra.mxu0 %vm254_vm0, %v75_v56 }
  0x4d   :  { %523 = vmatprep.mubr.f32.mxu0 %v1380_v5 }
  0x50   :  { %1333 = vmatmul.mubr.msk.f32.gmra.mxu0 %vm254_vm0, %v76_v57  ;;  %v673_v57 = vld [vmem:[%s2253_s2 + $0x8] sm:$0xff] }
  0x51   :  { %529 = vmatprep.mubr.f32.mxu0 %v1380_v5  ;;  %928 = vmatprep.mubr.f32.mxu1 %v673_v57 }
  0x54   :  { %1334 = vmatmul.mubr.msk.f32.gmra.mxu0 %vm254_vm0, %v77_v58 }
  0x55   :  { %535 = vmatprep.mubr.f32.mxu0 %v1380_v5 }
  0x58   :  { %1335 = vmatmul.mubr.msk.f32.gmra.mxu0 %vm254_vm0, %v78_v59 }
  0x59   :  { %541 = vmatprep.mubr.f32.mxu0 %v1380_v5 }
  0x5c   :  { %1336 = vmatmul.mubr.msk.f32.gmra.mxu0 %vm254_vm0, %v79_v60 }
  0x5d   :  { %547 = vmatprep.mubr.f32.mxu0 %v1380_v5 }
  0x60   :  { %1337 = vmatmul.mubr.msk.f32.gmra.mxu0 %vm254_vm0, %v80_v61 }
  0x61   :  { %553 = vmatprep.mubr.f32.mxu0 %v1380_v5 }
  0x64   :  { %1338 = vmatmul.mubr.msk.f32.gmra.mxu0 %vm254_vm0, %v81_v62 }
  0x65   :  { %559 = vmatprep.mubr.f32.mxu0 %v1380_v5 }
  0x68   :  { %1339 = vmatmul.mubr.msk.f32.gmra.mxu0 %vm254_vm0, %v82_v63 }
  0x69   :  { %565 = vmatprep.mubr.f32.mxu0 %v1380_v5 }
  0x6c   :  { %1340 = vmatmul.mubr.msk.f32.gmra.mxu0 %vm254_vm0, %v83_v0 }
  0x6d   :  { %571 = vmatprep.mubr.f32.mxu0 %v1380_v5 }
  0x70   :  { %1341 = vmatmul.mubr.msk.f32.gmra.mxu0 %vm254_vm0, %v84_v1 }
  0x71   :  { %577 = vmatprep.mubr.f32.mxu0 %v1380_v5 }
  0x74   :  { %1342 = vmatmul.mubr.msk.f32.gmra.mxu0 %vm254_vm0, %v85_v2 }
  0x75   :  { %583 = vmatprep.mubr.f32.mxu0 %v1380_v5 }
  0x78   :  { %1343 = vmatmul.mubr.msk.f32.gmra.mxu0 %vm254_vm0, %v86_v3 }
  0x79   :  { %589 = vmatprep.mubr.f32.mxu0 %v1380_v5 }
  0x7c   :  { %1344 = vmatmul.mubr.msk.f32.gmra.mxu0 %vm254_vm0, %v87_v4 }
  0x7d   :  { %595 = vmatprep.mubr.f32.mxu0 %v1380_v5 }
  0x80   :  { %1345 = vmatmul.mubr.msk.f32.gmra.mxu0 %vm254_vm0, %v88_v6 }
  0x81   :  { %601 = vmatprep.mubr.f32.mxu0 %v1380_v5 }
  0x82   :  { %v162_v2 = vpop.permute.xlu1 %161 }
  0x83   :  { %v172_v0 = vpop.permute.xlu0 %171 }
  0x84   :  { %1346 = vmatmul.mubr.msk.f32.gmra.mxu0 %vm254_vm0, %v89_v10 }
  0x86   :  { %v157_v7 = vpop.permute.xlu1 %156 }
  0x87   :  { %v167_v6 = vpop.permute.xlu0 %166 }
  0x8a   :  { %v147_v48 = vpop.permute.xlu1 %146 }
  0x8b   :  { %v152_v51 = vpop.permute.xlu0 %151 }
  0x8e   :  { %v137_v36 = vpop.permute.xlu1 %136 }
  0x8f   :  { %v142_v44 = vpop.permute.xlu0 %141 }
  0xc8   :  { %v1789_v13 = vpop.f32.mrf.mxu0 }
  0xca   :  { %v1791_v16 = vpop.f32.mrf.mxu0 }
  0xcc   :  { %v1793_v19 = vpop.f32.mrf.mxu0 }
  0xce   :  { %v1795_v22 = vpop.f32.mrf.mxu0 }
  0xd0   :  { %v1797_v25 = vpop.f32.mrf.mxu0 }
  0xd2   :  { %v1799_v28 = vpop.f32.mrf.mxu0 }
  0xd4   :  { %v1801_v31 = vpop.f32.mrf.mxu0 }
  0xd6   :  { %v1803_v5 = vpop.f32.mrf.mxu0 }
  0xd8   :  { %v1805_v34 = vpop.f32.mrf.mxu0 }
  0xda   :  { %v1807_v37 = vpop.f32.mrf.mxu0 }
  0xdc   :  { %v1809_v40 = vpop.f32.mrf.mxu0 }
  0xde   :  { %v1811_v43 = vpop.f32.mrf.mxu0 }
  0xe0   :  { %v1813_v46 = vpop.f32.mrf.mxu0 }
  0xe2   :  { %v1815_v49 = vpop.f32.mrf.mxu0 }
  0xe4   :  { %v1817_v52 = vpop.f32.mrf.mxu0 }
  0xe6   :  { %v1819_v55 = vpop.f32.mrf.mxu0 }
  0xe8   :  { %v1821_v56 = vpop.f32.mrf.mxu0 }
  0xea   :  { %v1826_v58 = vpop.f32.mrf.mxu0 }
  0xec   :  { %v471_v59 = vpop.f32.mrf.mxu0 }
  0xee   :  { %v473_v60 = vpop.f32.mrf.mxu0 }
  0xf0   :  { %v477_v61 = vpop.f32.mrf.mxu0 }
  0xf2   :  { %v479_v62 = vpop.f32.mrf.mxu0 }
  0xf4   :  { %v483_v63 = vpop.f32.mrf.mxu0 }
  0xf6   :  { %v485_v1 = vpop.f32.mrf.mxu0 }
  0xf8   :  { %v489_v3 = vpop.f32.mrf.mxu0 }
  0xf9   :  { %v490_v24 = vadd.f32 %v489_v3, %v157_v7 }
  0xfa   :  { %v491_v4 = vpop.f32.mrf.mxu0 }
  0xfb   :  { %v492_v27 = vadd.f32 %v491_v4, %v157_v7 }
  0xfc   :  { %v495_v10 = vpop.f32.mrf.mxu0 }
  0xfd   :  { %v496_v32 = vadd.f32 %v495_v10, %v162_v2  ;;  %v633_v10 = vmax.f32 %v492_v27, 0.0  ;;  %v468_v27 = vadd.f32 %v1826_v58, %v137_v36 }
  0xfe   :  { %v497_v54 = vpop.f32.mrf.mxu0 }
  0xff   :  { %v498_v35 = vadd.f32 %v497_v54, %v162_v2  ;;  %v480_v2 = vadd.f32 %v479_v62, %v147_v48 }
 0x100   :  { %v501_v53 = vpop.f32.mrf.mxu0 }
 0x101   :  { %v502_v39 = vadd.f32 %v501_v53, %v167_v6  ;;  %v635_v53 = vmax.f32 %v498_v35, 0.0 }
 0x102   :  { %v503_v50 = vpop.f32.mrf.mxu0 }
 0x103   :  { %v504_v42 = vadd.f32 %v503_v50, %v167_v6  ;;  %v636_v23 = vmax.f32 %v502_v39, 0.0  ;;  %v132_v50 = vpop.permute.xlu0 %131  ;;  %v634_v6 = vmax.f32 %v496_v32, 0.0  ;;  %v474_v39 = vadd.f32 %v473_v60, %v142_v44 }
 0x104   :  { %v507_v47 = vpop.f32.mrf.mxu0 }
 0x105   :  { %v508_v57 = vadd.f32 %v507_v47, %v172_v0  ;;  %v637_v26 = vmax.f32 %v504_v42, 0.0  ;;  %v478_v42 = vadd.f32 %v477_v61, %v147_v48  ;;  %v629_v48 = vmax.f32 %v480_v2, 0.0 }
 0x106   :  { %v509_v45 = vpop.f32.mrf.mxu0  ;;  %v627_v61 = vmax.f32 %v474_v39, 0.0 }
 0x107   :  { %v510_v41 = vadd.f32 %v509_v45, %v172_v0  ;;  %v638_v30 = vmax.f32 %v508_v57, 0.0  ;;  %v486_v45 = vadd.f32 %v485_v1, %v152_v51  ;;  %v484_v0 = vadd.f32 %v483_v63, %v152_v51 }
 0x108   :  { %v1828_v38 = vpop.f32.mrf.mxu0  ;;  %v1382_v1 = vmov 1   ;;  %v628_v51 = vmax.f32 %v478_v42, 0.0 }
 0x109   :  { %v639_v33 = vmax.f32 %v510_v41, 0.0  ;;  %v127_v41 = vpop.permute.xlu1 %126  ;;  %1354 = vset.pattern.permute.xlu0 %v1382_v1  ;;  %v630_v35 = vmax.f32 %v484_v0, 0.0  ;;  %1355 = vset.pattern.permute.xlu1 %v1382_v1 }
 0x10a   :  { %v1830_v29 = vpop.f32.mrf.mxu0  ;;  %797 = vperm.xlu0 %1354, %v1450_v9   ;;  %793 = vperm.xlu1 %1355, %v1466_v12   ;;  %v460_v9 = vadd.f32 %v1817_v52, %v132_v50  ;;  %v454_v63 = vadd.f32 %v1813_v46, %v127_v41 }
 0x10b   :  { %864 = vmatprep.subr.mxu1 %v639_v33  ;;  %v632_v33 = vmax.f32 %v490_v24, 0.0  ;;  %v466_v24 = vadd.f32 %v1821_v56, %v137_v36  ;;  %v456_v36 = vadd.f32 %v1815_v49, %v127_v41  ;;  %v625_v56 = vmax.f32 %v468_v27, 0.0 }
 0x10c   :  { %v1832_v47 = vpop.f32.mrf.mxu0  ;;  %865 = vmatpush1.msra.mxu1 %v638_v30  ;;  %v631_v30 = vmax.f32 %v486_v45, 0.0 }
 0x10d   :  { %866 = vmatprep.subr.mxu1 %v637_v26  ;;  %v472_v26 = vadd.f32 %v471_v59, %v142_v44  ;;  %v117_v44 = vpop.permute.xlu1 %116  ;;  %v462_v59 = vadd.f32 %v1819_v55, %v132_v50  ;;  %v624_v12 = vmax.f32 %v466_v24, 0.0  ;;  %v621_v45 = vmax.f32 %v456_v36, 0.0  ;;  %v2310_v36 = vld [vmem:[#allocation12_spill] sm:$0xff] }
 0x10e   :  { %v1834_v54 = vpop.f32.mrf.mxu0  ;;  %867 = vmatpush1.msra.mxu1 %v636_v23  ;;  %v122_v23 = vpop.permute.xlu0 %121  ;;  %785 = vperm.xlu0 %1354, %v1461_v11   ;;  %v622_v11 = vmax.f32 %v460_v9, 0.0  ;;  %v444_v49 = vadd.f32 %v1807_v37, %v117_v44  ;;  %v2309_v9 = vld [vmem:[#allocation11_spill] sm:$0xff] }
 0x10f   :  { %868 = vmatprep.subr.mxu1 %v635_v53  ;;  %v626_v62 = vmax.f32 %v472_v26, 0.0  ;;  %789 = vperm.xlu1 %1355, %v1445_v8   ;;  %v450_v52 = vadd.f32 %v1811_v43, %v122_v23  ;;  %v623_v4 = vmax.f32 %v462_v59, 0.0  ;;  %v448_v57 = vadd.f32 %v1809_v40, %v122_v23  ;;  %v2304_v23 = vld [vmem:[#allocation6_spill] sm:$0xff] }
 0x110   :  { %v1836_v7 = vpop.f32.mrf.mxu0  ;;  %869 = vmatpush1.msra.mxu1 %v634_v6  ;;  %v442_v8 = vadd.f32 %v1805_v34, %v117_v44  ;;  %v620_v53 = vmax.f32 %v454_v63, 0.0  ;;  %v617_v2 = vmax.f32 %v444_v49, 0.0  ;;  %v2308_v59 = vld [vmem:[#allocation10_spill] sm:$0xff]  ;;  %v2311_v63 = vld [vmem:[#allocation13_spill] sm:$0xff]  ;;  %v2314_v49 = vld [vmem:[#allocation16_spill] sm:$0xff] }
 0x111   :  { %870 = vmatprep.subr.mxu1 %v633_v10  ;;  %v107_v46 = vpop.permute.xlu1 %106  ;;  %v619_v43 = vmax.f32 %v450_v52, 0.0  ;;  %v2312_v52 = vld [vmem:[#allocation14_spill] sm:$0xff] }
 0x112   :  { %v1838_v32 = vpop.f32.mrf.mxu0  ;;  %871 = vmatpush1.msra.mxu1 %v632_v33  ;;  %v112_v55 = vpop.permute.xlu0 %111  ;;  %777 = vperm.xlu0 %1354, %v1478_v14   ;;  %v618_v14 = vmax.f32 %v448_v57, 0.0  ;;  %v432_v34 = vadd.f32 %v1799_v28, %v107_v46  ;;  %v430_v10 = vadd.f32 %v1797_v25, %v107_v46 }
 0x113   :  { %872 = vmatprep.subr.mxu1 %v631_v30  ;;  %781 = vperm.xlu1 %1355, %v1483_v15   ;;  %v438_v40 = vadd.f32 %v1803_v5, %v112_v55  ;;  %v436_v6 = vadd.f32 %v1801_v31, %v112_v55  ;;  %v616_v15 = vmax.f32 %v442_v8, 0.0 }
 0x114   :  { %v1843_v60 = vpop.f32.mrf.mxu0  ;;  %873 = vmatpush1.msra.mxu1 %v630_v35  ;;  %v613_v28 = vmax.f32 %v432_v34, 0.0 }
 0x115   :  { %874 = vmatprep.subr.mxu1 %v629_v48  ;;  %v97_v31 = vpop.permute.xlu1 %96  ;;  %v615_v33 = vmax.f32 %v438_v40, 0.0  ;;  %v614_v39 = vmax.f32 %v436_v6, 0.0  ;;  %v2316_v6 = vld [vmem:[#allocation18_spill] sm:$0xff] }
 0x116   :  { %v1848_v58 = vpop.f32.mrf.mxu0  ;;  %875 = vmatpush1.msra.mxu1 %v628_v51  ;;  %769 = vperm.xlu0 %1354, %v1495_v17   ;;  %v102_v37 = vpop.permute.xlu0 %101  ;;  %v420_v25 = vadd.f32 %v1791_v16, %v97_v31  ;;  %v418_v1 = vadd.f32 %v1789_v13, %v97_v31  ;;  %v2305_v13 = vld [vmem:[#allocation7_spill] sm:$0xff]  ;;  %v2307_v51 = vld [vmem:[#allocation9_spill] sm:$0xff] }
 0x117   :  { %876 = vmatprep.subr.mxu1 %v627_v61  ;;  %773 = vperm.xlu1 %1355, %v1500_v18   ;;  %v426_v5 = vadd.f32 %v1795_v22, %v102_v37  ;;  %v424_v17 = vadd.f32 %v1793_v19, %v102_v37  ;;  %v612_v18 = vmax.f32 %v430_v10, 0.0  ;;  %v2317_v37 = vld [vmem:[#allocation19_spill] sm:$0xff]  ;;  %v2318_v10 = vld [vmem:[#allocation20_spill] sm:$0xff] }
 0x118   :  { %v1853_v3 = vpop.f32.mrf.mxu0  ;;  %877 = vmatpush1.msra.mxu1 %v626_v62  ;;  %v608_v16 = vmax.f32 %v418_v1, 0.0 }
 0x119   :  { %878 = vmatprep.subr.mxu1 %v625_v56  ;;  %v611_v22 = vmax.f32 %v426_v5, 0.0  ;;  %v610_v19 = vmax.f32 %v424_v17, 0.0  ;;  %v2319_v5 = vld [vmem:[#allocation21_spill] sm:$0xff] }
 0x11a   :  { %v1858_v50 = vpop.f32.mrf.mxu0  ;;  %879 = vmatpush1.msra.mxu1 %v624_v12  ;;  %761 = vperm.xlu0 %1354, %v1512_v20   ;;  %v609_v20 = vmax.f32 %v420_v25, 0.0  ;;  %v252_v12 = vpop.permute.xlu0 %251 }
 0x11b   :  { %880 = vmatprep.subr.mxu1 %v623_v4  ;;  %765 = vperm.xlu1 %1355, %v1517_v21   ;;  %v2306_v21 = vld [vmem:[#allocation8_spill] sm:$0xff]  ;;  %v247_v4 = vpop.permute.xlu1 %246 }
 0x11c   :  { %v1863_v0 = vpop.f32.mrf.mxu0  ;;  %881 = vmatpush1.msra.mxu1 %v622_v11  ;;  %v2313_v11 = vld [vmem:[#allocation15_spill] sm:$0xff] }
 0x11d   :  { %882 = vmatprep.subr.mxu1 %v621_v45 }
 0x11e   :  { %v1868_v41 = vpop.f32.mrf.mxu0  ;;  %883 = vmatpush1.msra.mxu1 %v620_v53  ;;  %753 = vperm.xlu0 %1354, %v2304_v23   ;;  %v242_v45 = vpop.permute.xlu0 %241  ;;  %v2315_v53 = vld [vmem:[#allocation17_spill] sm:$0xff] }
 0x11f   :  { %884 = vmatprep.subr.mxu1 %v619_v43  ;;  %757 = vperm.xlu1 %1355, %v2305_v13   ;;  %v237_v40 = vpop.permute.xlu1 %236 }
 0x120   :  { %v1873_v42 = vpop.f32.mrf.mxu0  ;;  %885 = vmatpush1.msra.mxu1 %v618_v14 }
 0x121   :  { %886 = vmatprep.subr.mxu1 %v617_v2 }
 0x122   :  { %v1878_v30 = vpop.f32.mrf.mxu0  ;;  %887 = vmatpush1.msra.mxu1 %v616_v15  ;;  %745 = vperm.xlu0 %1354, %v2306_v21   ;;  %v232_v34 = vpop.permute.xlu0 %231  ;;  %v2322_v21 = vld [vmem:[#allocation24_spill] sm:$0xff] }
 0x123   :  { %888 = vmatprep.subr.mxu1 %v615_v33  ;;  %749 = vperm.xlu1 %1355, %v2307_v51   ;;  %v227_v15 = vpop.permute.xlu1 %226 }
 0x124   :  { %v1883_v26 = vpop.f32.mrf.mxu0  ;;  %889 = vmatpush1.msra.mxu1 %v614_v39  ;;  %v2320_v39 = vld [vmem:[#allocation22_spill] sm:$0xff] }
 0x125   :  { %890 = vmatprep.subr.mxu1 %v613_v28 }
 0x126   :  { %v1886_v35 = vpop.f32.mrf.mxu0  ;;  %891 = vmatpush1.msra.mxu1 %v612_v18  ;;  %737 = vperm.xlu0 %1354, %v2308_v59   ;;  %v222_v25 = vpop.permute.xlu0 %221 }
 0x127   :  { %892 = vmatprep.subr.mxu1 %v611_v22  ;;  %741 = vperm.xlu1 %1355, %v2309_v9   ;;  %v2321_v22 = vld [vmem:[#allocation23_spill] sm:$0xff] }
 0x128   :  { %v1889_v27 = vpop.f32.mrf.mxu0  ;;  %893 = vmatpush1.msra.mxu1 %v610_v19  ;;  %v217_v19 = vpop.permute.xlu1 %216 }
 0x129   :  { %894 = vmatprep.subr.mxu1 %v609_v20 }
 0x12a   :  { %v1892_v48 = vpop.f32.mrf.mxu0  ;;  %895 = vmatpush1.msra.mxu1 %v608_v16  ;;  %857 = vperm.xlu0 %1354, %v2310_v36  }
 0x12b   :  { %861 = vperm.xlu1 %1355, %v2311_v63   ;;  %v2323_v63 = vld [vmem:[#allocation25_spill] sm:$0xff] }
 0x12c   :  { %v1895_v24 = vpop.f32.mrf.mxu0 }
 0x12e   :  { %v1898_v44 = vpop.f32.mrf.mxu0  ;;  %849 = vperm.xlu0 %1354, %v2312_v52   ;;  %v212_v52 = vpop.permute.xlu0 %211 }
 0x12f   :  { %853 = vperm.xlu1 %1355, %v2313_v11  }
 0x130   :  { %v573_v61 = vpop.f32.mrf.mxu0 }
 0x132   :  { %v575_v62 = vpop.f32.mrf.mxu0  ;;  %841 = vperm.xlu0 %1354, %v2314_v49  }
 0x133   :  { %845 = vperm.xlu1 %1355, %v2315_v53   ;;  %v2324_v53 = vld [vmem:[#allocation26_spill] sm:$0xff] }
 0x134   :  { %v579_v56 = vpop.f32.mrf.mxu0 }
 0x135   :  { %v580_v11 = vadd.f32 %v579_v56, %v232_v34 }
 0x136   :  { %v581_v55 = vpop.f32.mrf.mxu0  ;;  %833 = vperm.xlu0 %1354, %v2316_v6  }
 0x137   :  { %837 = vperm.xlu1 %1355, %v2317_v37   ;;  %v662_v56 = vmax.f32 %v580_v11, 0.0  ;;  %v2326_v37 = vmov 0   ;;  %v676_v11 = vld [vmem:[%s2253_s2 + $0x20] sm:$0xff] }
 0x138   :  { %v585_v57 = vpop.f32.mrf.mxu0 }
 0x139   :  { %v586_v9 = vadd.f32 %v585_v57, %v237_v40  ;;  %v2325_v57 = vld [vmem:[#allocation27_spill] sm:$0xff] }
 0x13a   :  { %v587_v46 = vpop.f32.mrf.mxu0  ;;  %825 = vperm.xlu0 %1354, %v2318_v10  }
 0x13b   :  { %829 = vperm.xlu1 %1355, %v2319_v5   ;;  %v588_v51 = vadd.f32 %v587_v46, %v237_v40  ;;  %v574_v46 = vadd.f32 %v573_v61, %v227_v15  ;;  %v664_v6 = vmax.f32 %v586_v9, 0.0  ;;  %v570_v40 = vadd.f32 %v1898_v44, %v222_v25 }
 0x13c   :  { %v591_v8 = vpop.f32.mrf.mxu0  ;;  %v562_v61 = vadd.f32 %v1889_v27, %v217_v19 }
 0x13d   :  { %v592_v16 = vadd.f32 %v591_v8, %v242_v45  ;;  %v576_v8 = vadd.f32 %v575_v62, %v227_v15  ;;  %v564_v62 = vadd.f32 %v1892_v48, %v217_v19  ;;  %v660_v10 = vmax.f32 %v574_v46, 0.0  ;;  %v682_v46 = vld [vmem:[%s2253_s2 + $0x50] sm:$0xff] }
 0x13e   :  { %v593_v43 = vpop.f32.mrf.mxu0  ;;  %817 = vperm.xlu0 %1354, %v2320_v39   ;;  %v558_v15 = vadd.f32 %v1886_v35, %v212_v52  ;;  %v656_v27 = vmax.f32 %v562_v61, 0.0  ;;  %v695_v61 = vld [vmem:[%s2253_s2 + $0xb8] sm:$0xff] }
 0x13f   :  { %821 = vperm.xlu1 %1355, %v2321_v22   ;;  %v594_v23 = vadd.f32 %v593_v43, %v242_v45  ;;  %v666_v49 = vmax.f32 %v592_v16, 0.0  ;;  %v207_v45 = vpop.permute.xlu1 %206  ;;  %v665_v43 = vmax.f32 %v588_v51, 0.0  ;;  %v657_v48 = vmax.f32 %v564_v62, 0.0  ;;  %v693_v62 = vld [vmem:[%s2253_s2 + $0xa8] sm:$0xff] }
 0x140   :  { %v597_v14 = vpop.f32.mrf.mxu0 }
 0x141   :  { %v598_v18 = vadd.f32 %v597_v14, %v247_v4 }
 0x142   :  { %v599_v2 = vpop.f32.mrf.mxu0  ;;  %809 = vperm.xlu0 %1354, %v2322_v21  }
 0x143   :  { %v600_v28 = vadd.f32 %v599_v2, %v247_v4  ;;  %v668_v36 = vmax.f32 %v598_v18, 0.0  ;;  %813 = vperm.xlu1 %1355, %v2323_v63   ;;  %v667_v4 = vmax.f32 %v594_v23, 0.0  ;;  %v661_v2 = vmax.f32 %v576_v8, 0.0  ;;  %v197_v44 = vpop.permute.xlu1 %196  ;;  %v680_v8 = vld [vmem:[%s2253_s2 + $0x40] sm:$0xff] }
 0x144   :  { %v603_v31 = vpop.f32.mrf.mxu0  ;;  %v540_v18 = vadd.f32 %v1858_v50, %v197_v44 }
 0x145   :  { %v604_v33 = vadd.f32 %v603_v31, %v252_v12  ;;  %v669_v59 = vmax.f32 %v600_v28, 0.0  ;;  %v659_v31 = vmax.f32 %v570_v40, 0.0  ;;  %v655_v28 = vmax.f32 %v558_v15, 0.0  ;;  %v687_v40 = vld [vmem:[%s2253_s2 + $0x78] sm:$0xff]  ;;  %v696_v15 = vld [vmem:[%s2253_s2 + $0xc0] sm:$0xff] }
 0x146   :  { %v605_v17 = vpop.f32.mrf.mxu0  ;;  %801 = vperm.xlu0 %1354, %v2324_v53   ;;  %v678_v53 = vld [vmem:[%s2253_s2 + $0x30] sm:$0xff] }
 0x147   :  { %v606_v1 = vadd.f32 %v605_v17, %v252_v12  ;;  %v670_v13 = vmax.f32 %v604_v33, 0.0  ;;  %v582_v12 = vadd.f32 %v581_v55, %v232_v34  ;;  %805 = vperm.xlu1 %1355, %v2325_v57   ;;  %v568_v55 = vadd.f32 %v1895_v24, %v222_v25  ;;  %v202_v34 = vpop.permute.xlu0 %201  ;;  %v684_v57 = vld [vmem:[%s2253_s2 + $0x60] sm:$0xff] }
 0x148   :  { %v556_v24 = vadd.f32 %v1883_v26, %v212_v52  ;;  %v552_v33 = vadd.f32 %v1878_v30, %v207_v45  ;;  %v550_v17 = vadd.f32 %v1873_v42, %v207_v45  ;;  %v546_v25 = vadd.f32 %v1868_v41, %v202_v34  ;;  %v187_v26 = vpop.permute.xlu1 %186  ;;  %v681_v45 = vld [vmem:[%s2253_s2 + $0x48] sm:$0xff] }
 0x149   :  { %v671_v20 = vmax.f32 %v606_v1, 0.0  ;;  %v663_v14 = vmax.f32 %v582_v12, 0.0  ;;  %v658_v5 = vmax.f32 %v568_v55, 0.0  ;;  %v544_v35 = vadd.f32 %v1863_v0, %v202_v34  ;;  %v689_v55 = vld [vmem:[%s2253_s2 + $0x88] sm:$0xff]  ;;  %v690_v34 = vld [vmem:[%s2253_s2 + $0x90] sm:$0xff] }
 0x14a   :  { %1357 = vset.pattern.permute.xlu0 %v2326_v37  ;;  %v654_v1 = vmax.f32 %v556_v24, 0.0  ;;  %v653_v22 = vmax.f32 %v552_v33, 0.0  ;;  %v538_v30 = vadd.f32 %v1853_v3, %v197_v44  ;;  %v652_v19 = vmax.f32 %v550_v17, 0.0  ;;  %v697_v44 = vld [vmem:[%s2253_s2 + $0xc8] sm:$0xff]  ;;  %v698_v24 = vld [vmem:[%s2253_s2 + $0xd0] sm:$0xff]  ;;  %v700_v33 = vld [vmem:[%s2253_s2 + $0xe0] sm:$0xff] }
 0x14b   :  { %896 = vmatprep.subr.mxu1 %v671_v20  ;;  %1356 = vset.pattern.permute.xlu1 %v2326_v37  ;;  %v192_v39 = vpop.permute.xlu0 %191  ;;  %v651_v23 = vmax.f32 %v546_v25, 0.0  ;;  %v650_v20 = vmax.f32 %v544_v35, 0.0  ;;  %v528_v16 = vadd.f32 %v1838_v32, %v187_v26  ;;  %v526_v50 = vadd.f32 %v1836_v7, %v187_v26  ;;  %v691_v37 = vld [vmem:[%s2253_s2 + $0x98] sm:$0xff]  ;;  %v702_v17 = vld [vmem:[%s2253_s2 + $0xf0] sm:$0xff]  ;;  %v709_v35 = vld [vmem:[%s2253_s2 + $0x128] sm:$0xff] }
 0x14c   :  { %897 = vmatpush2.msra.mxu1 %v670_v13  ;;  %v534_v42 = vadd.f32 %v1848_v58, %v192_v39  ;;  %v532_v41 = vadd.f32 %v1843_v60, %v192_v39  ;;  %v649_v13 = vmax.f32 %v540_v18, 0.0  ;;  %v648_v21 = vmax.f32 %v538_v30, 0.0  ;;  %v177_v3 = vpop.permute.xlu1 %176  ;;  %v704_v39 = vld [vmem:[%s2253_s2 + $0x100] sm:$0xff]  ;;  %v707_v25 = vld [vmem:[%s2253_s2 + $0x118] sm:$0xff]  ;;  %v710_v18 = vld [vmem:[%s2253_s2 + $0x130] sm:$0xff] }
 0x14d   :  { %898 = vmatprep.subr.mxu1 %v669_v59  ;;  %v516_v60 = vadd.f32 %v1830_v29, %v177_v3  ;;  %v514_v32 = vadd.f32 %v1828_v38, %v177_v3  ;;  %v644_v63 = vmax.f32 %v526_v50, 0.0  ;;  %v675_v29 = vld [vmem:[%s2253_s2 + $0x18] sm:$0xff]  ;;  %v674_v38 = vld [vmem:[%s2253_s2 + $0x10] sm:$0xff]  ;;  %v712_v30 = vld [vmem:[%s2253_s2 + $0x140] sm:$0xff] }
 0x14e   :  { %899 = vmatpush2.msra.mxu1 %v668_v36  ;;  %v647_v59 = vmax.f32 %v534_v42, 0.0  ;;  %v646_v9 = vmax.f32 %v532_v41, 0.0  ;;  %v645_v36 = vmax.f32 %v528_v16, 0.0  ;;  %v711_v26 = vld [vmem:[%s2253_s2 + $0x138] sm:$0xff]  ;;  %v714_v42 = vld [vmem:[%s2253_s2 + $0x150] sm:$0xff]  ;;  %v716_v41 = vld [vmem:[%s2253_s2 + $0x160] sm:$0xff] }
 0x14f   :  { %900 = vmatprep.subr.mxu1 %v667_v4  ;;  %v182_v0 = vpop.permute.xlu0 %181  ;;  %v641_v12 = vmax.f32 %v516_v60, 0.0  ;;  %v677_v4 = vld [vmem:[%s2253_s2 + $0x28] sm:$0xff]  ;;  %v723_v50 = vld [vmem:[%s2253_s2 + $0x198] sm:$0xff]  ;;  %v728_v60 = vld [vmem:[%s2253_s2 + $0x1c0] sm:$0xff] }
 0x150   :  { %901 = vmatpush2.msra.mxu1 %v666_v49  ;;  %v522_v51 = vadd.f32 %v1834_v54, %v182_v0  ;;  %v520_v58 = vadd.f32 %v1832_v47, %v182_v0  ;;  %v640_v54 = vmax.f32 %v514_v32, 0.0  ;;  %v672_v47 = vld [vmem:[%s2253_s2] sm:$0xff]  ;;  %v679_v49 = vld [vmem:[%s2253_s2 + $0x38] sm:$0xff]  ;;  %v718_v0 = vld [vmem:[%s2253_s2 + $0x170] sm:$0xff] }
 0x151   :  { %902 = vmatprep.subr.mxu1 %v665_v43  ;;  %v683_v43 = vld [vmem:[%s2253_s2 + $0x58] sm:$0xff]  ;;  %v721_v16 = vld [vmem:[%s2253_s2 + $0x188] sm:$0xff]  ;;  %v730_v32 = vld [vmem:[%s2253_s2 + $0x1d0] sm:$0xff] }
 0x152   :  { %903 = vmatpush2.msra.mxu1 %v664_v6  ;;  %v643_v7 = vmax.f32 %v522_v51, 0.0  ;;  %v642_v52 = vmax.f32 %v520_v58, 0.0  ;;  %v685_v6 = vld [vmem:[%s2253_s2 + $0x68] sm:$0xff]  ;;  %v724_v51 = vld [vmem:[%s2253_s2 + $0x1a0] sm:$0xff]  ;;  %v726_v58 = vld [vmem:[%s2253_s2 + $0x1b0] sm:$0xff] }
 0x153   :  { %904 = vmatprep.subr.mxu1 %v663_v14  ;;  %v686_v14 = vld [vmem:[%s2253_s2 + $0x70] sm:$0xff]  ;;  %v725_v3 = vld [vmem:[%s2253_s2 + $0x1a8] sm:$0xff] }
 0x154   :  { %905 = vmatpush2.msra.mxu1 %v662_v56  ;;  %v688_v56 = vld [vmem:[%s2253_s2 + $0x80] sm:$0xff] }
 0x155   :  { %906 = vmatprep.subr.mxu1 %v661_v2  ;;  %v692_v2 = vld [vmem:[%s2253_s2 + $0xa0] sm:$0xff] }
 0x156   :  { %907 = vmatpush2.msra.mxu1 %v660_v10  ;;  %v694_v10 = vld [vmem:[%s2253_s2 + $0xb0] sm:$0xff] }
 0x157   :  { %908 = vmatprep.subr.mxu1 %v659_v31  ;;  %v699_v31 = vld [vmem:[%s2253_s2 + $0xd8] sm:$0xff] }
 0x158   :  { %909 = vmatpush2.msra.mxu1 %v658_v5  ;;  %v701_v5 = vld [vmem:[%s2253_s2 + $0xe8] sm:$0xff] }
 0x159   :  { %910 = vmatprep.subr.mxu1 %v657_v48  ;;  %v703_v48 = vld [vmem:[%s2253_s2 + $0xf8] sm:$0xff] }
 0x15a   :  { %911 = vmatpush2.msra.mxu1 %v656_v27  ;;  %v705_v27 = vld [vmem:[%s2253_s2 + $0x108] sm:$0xff] }
 0x15b   :  { %912 = vmatprep.subr.mxu1 %v655_v28  ;;  %v706_v28 = vld [vmem:[%s2253_s2 + $0x110] sm:$0xff] }
 0x15c   :  { %913 = vmatpush2.msra.mxu1 %v654_v1  ;;  %v708_v1 = vld [vmem:[%s2253_s2 + $0x120] sm:$0xff] }
 0x15d   :  { %914 = vmatprep.subr.mxu1 %v653_v22  ;;  %v713_v22 = vld [vmem:[%s2253_s2 + $0x148] sm:$0xff] }
 0x15e   :  { %915 = vmatpush2.msra.mxu1 %v652_v19  ;;  %v715_v19 = vld [vmem:[%s2253_s2 + $0x158] sm:$0xff] }
 0x15f   :  { %916 = vmatprep.subr.mxu1 %v651_v23  ;;  %v717_v23 = vld [vmem:[%s2253_s2 + $0x168] sm:$0xff] }
 0x160   :  { %917 = vmatpush2.msra.mxu1 %v650_v20  ;;  %v719_v20 = vld [vmem:[%s2253_s2 + $0x178] sm:$0xff] }
 0x161   :  { %918 = vmatprep.subr.mxu1 %v649_v13  ;;  %v720_v13 = vld [vmem:[%s2253_s2 + $0x180] sm:$0xff] }
 0x162   :  { %919 = vmatpush2.msra.mxu1 %v648_v21  ;;  %v722_v21 = vld [vmem:[%s2253_s2 + $0x190] sm:$0xff] }
 0x163   :  { %920 = vmatprep.subr.mxu1 %v647_v59  ;;  %v727_v59 = vld [vmem:[%s2253_s2 + $0x1b8] sm:$0xff] }
 0x164   :  { %921 = vmatpush2.msra.mxu1 %v646_v9  ;;  %v729_v9 = vld [vmem:[%s2253_s2 + $0x1c8] sm:$0xff] }
 0x165   :  { %922 = vmatprep.subr.mxu1 %v645_v36  ;;  %v731_v36 = vld [vmem:[%s2253_s2 + $0x1d8] sm:$0xff] }
 0x166   :  { %923 = vmatpush2.msra.mxu1 %v644_v63  ;;  %v733_v63 = vld [vmem:[%s2253_s2 + $0x1e8] sm:$0xff] }
 0x167   :  { %924 = vmatprep.subr.mxu1 %v643_v7  ;;  %v732_v7 = vld [vmem:[%s2253_s2 + $0x1e0] sm:$0xff] }
 0x168   :  { %925 = vmatpush2.msra.mxu1 %v642_v52  ;;  %v735_v52 = vld [vmem:[%s2253_s2 + $0x1f8] sm:$0xff] }
 0x169   :  { %926 = vmatprep.subr.mxu1 %v641_v12  ;;  %v734_v12 = vld [vmem:[%s2253_s2 + $0x1f0] sm:$0xff] }
 0x16a   :  { %927 = vmatpush2.msra.mxu1 %v640_v54 }
 0x16b   :  { %929 = vmatmul.mubr.f32.vlgmr.msra.gmra.mxu1 %v672_v47 }
 0x16c   :  { %934 = vmatprep.mubr.f32.mxu1 %v675_v29 }
 0x16f   :  { %935 = vmatmul.mubr.f32.gmra.mxu1 %v674_v38 }
 0x170   :  { %940 = vmatprep.mubr.f32.mxu1 %v677_v4 }
 0x173   :  { %941 = vmatmul.mubr.f32.gmra.mxu1 %v676_v11 }
 0x174   :  { %946 = vmatprep.mubr.f32.mxu1 %v679_v49 }
 0x177   :  { %947 = vmatmul.mubr.f32.gmra.mxu1 %v678_v53 }
 0x178   :  { %952 = vmatprep.mubr.f32.mxu1 %v681_v45 }
 0x17b   :  { %953 = vmatmul.mubr.f32.gmra.mxu1 %v680_v8 }
 0x17c   :  { %958 = vmatprep.mubr.f32.mxu1 %v683_v43 }
 0x17f   :  { %959 = vmatmul.mubr.f32.gmra.mxu1 %v682_v46 }
 0x180   :  { %964 = vmatprep.mubr.f32.mxu1 %v685_v6 }
 0x183   :  { %965 = vmatmul.mubr.f32.gmra.mxu1 %v684_v57 }
 0x184   :  { %970 = vmatprep.mubr.f32.mxu1 %v687_v40  ;;  %v1192_v40 = vlaneseq }
 0x186   :  { %vm1298_vm1 = vcmp.lt.s32.totalorder %v1192_v40, 256 }
 0x187   :  { %971 = vmatmul.mubr.f32.gmra.mxu1 %v686_v14 }
 0x188   :  { %976 = vmatprep.mubr.f32.mxu1 %v689_v55  ;;  %v2160_v55 = vshrl.u32 %v1192_v40, 7 }
 0x18b   :  { %977 = vmatmul.mubr.f32.gmra.mxu1 %v688_v56 }
 0x18c   :  { %982 = vmatprep.mubr.f32.mxu1 %v691_v37  ;;  %v1203_v37 = vsub.s32 1, %v2160_v55 }
 0x18f   :  { %983 = vmatmul.mubr.f32.gmra.mxu1 %v690_v34  ;;  %v2168_v34 = vld [vmem:[%s2255_s4] sm:$0x3]  ;;  %s1384_s4 = smov [#allocation3]  }
 0x190   :  { %988 = vmatprep.mubr.f32.mxu1 %v693_v62  ;;  %s1307_s17 = sshll.u32 %s1384_s4, 4  ;;  %s1308_s17 = int_to_ptr.vmem [resolvable:$true] %s1307_s17 }
 0x191   :  { %s1358_s18 = scalar_lea.vmem %s1308_s17, 32  ;;  %p1363_p1 = scmp.lt.s32.totalorder %s1308_s17, %s1308_s17 }
 0x192   :  { %p1359_p0 = scmp.ne.s32.totalorder %s1308_s17, %s1358_s18  ;;  %p1364_p2 = scmp.lt.s32.totalorder %s1358_s18, %s1358_s18 }
 0x193   :  { %989 = vmatmul.mubr.f32.gmra.mxu1 %v692_v2  ;;  %v1204_v2 = vrot.slane %v2168_v34, %v1203_v37 }
 0x194   :  { %994 = vmatprep.mubr.f32.mxu1 %v695_v61  ;;  %p1365_p3 = por %p1364_p2, %p1363_p1 }
 0x195   :  { %1271 = vmatprep.mubr.f32.mxu0 %v1204_v2 }
 0x196   :  { %p1366_p4 = pnand %p1365_p3, %p1359_p0 }
 0x197   :  { %995 = vmatmul.mubr.f32.gmra.mxu1 %v694_v10  ;;  %v1186_v10 = vld [vmem:[#allocation2] sm:$0x1] }
 0x198   :  { %1000 = vmatprep.mubr.f32.mxu1 %v697_v44  ;;  %1189 = vperm.xlu1 %1356, %v1186_v10  }
 0x19b   :  { %1001 = vmatmul.mubr.f32.gmra.mxu1 %v696_v15 }
 0x19c   :  { %1006 = vmatprep.mubr.f32.mxu1 %v699_v31 }
 0x19f   :  { %1007 = vmatmul.mubr.f32.gmra.mxu1 %v698_v24 }
 0x1a0   :  { %1012 = vmatprep.mubr.f32.mxu1 %v701_v5 }
 0x1a3   :  { %1013 = vmatmul.mubr.f32.gmra.mxu1 %v700_v33  ;;  %v794_v33 = vpop.permute.xlu1 %793 }
 0x1a4   :  { %1018 = vmatprep.mubr.f32.mxu1 %v703_v48 }
 0x1a7   :  { %1019 = vmatmul.mubr.f32.gmra.mxu1 %v702_v17  ;;  %v798_v17 = vpop.permute.xlu0 %797 }
 0x1a8   :  { %1024 = vmatprep.mubr.f32.mxu1 %v705_v27 }
 0x1ab   :  { %1025 = vmatmul.mubr.f32.gmra.mxu1 %v704_v39 }
 0x1ac   :  { %1030 = vmatprep.mubr.f32.mxu1 %v707_v25  ;;  %v790_v25 = vpop.permute.xlu1 %789 }
 0x1af   :  { %1031 = vmatmul.mubr.f32.gmra.mxu1 %v706_v28 }
 0x1b0   :  { %1036 = vmatprep.mubr.f32.mxu1 %v709_v35  ;;  %v786_v35 = vpop.permute.xlu0 %785 }
 0x1b3   :  { %1037 = vmatmul.mubr.f32.gmra.mxu1 %v708_v1 }
 0x1b4   :  { %1042 = vmatprep.mubr.f32.mxu1 %v711_v26 }
 0x1b7   :  { %1043 = vmatmul.mubr.f32.gmra.mxu1 %v710_v18  ;;  %v782_v18 = vpop.permute.xlu1 %781 }
 0x1b8   :  { %1048 = vmatprep.mubr.f32.mxu1 %v713_v22 }
 0x1bb   :  { %1049 = vmatmul.mubr.f32.gmra.mxu1 %v712_v30  ;;  %v778_v30 = vpop.permute.xlu0 %777 }
 0x1bc   :  { %1054 = vmatprep.mubr.f32.mxu1 %v715_v19 }
 0x1bf   :  { %1055 = vmatmul.mubr.f32.gmra.mxu1 %v714_v42 }
 0x1c0   :  { %1060 = vmatprep.mubr.f32.mxu1 %v717_v23 }
 0x1c3   :  { %1061 = vmatmul.mubr.f32.gmra.mxu1 %v716_v41  ;;  %v774_v41 = vpop.permute.xlu1 %773 }
 0x1c4   :  { %1066 = vmatprep.mubr.f32.mxu1 %v719_v20 }
 0x1c7   :  { %1067 = vmatmul.mubr.f32.gmra.mxu1 %v718_v0 }
 0x1c8   :  { %1072 = vmatprep.mubr.f32.mxu1 %v721_v16 }
 0x1cb   :  { %1073 = vmatmul.mubr.f32.gmra.mxu1 %v720_v13 }
 0x1cc   :  { %1078 = vmatprep.mubr.f32.mxu1 %v723_v50  ;;  %v770_v50 = vpop.permute.xlu0 %769 }
 0x1cf   :  { %1079 = vmatmul.mubr.f32.gmra.mxu1 %v722_v21 }
 0x1d0   :  { %1084 = vmatprep.mubr.f32.mxu1 %v725_v3 }
 0x1d3   :  { %1085 = vmatmul.mubr.f32.gmra.mxu1 %v724_v51 }
 0x1d4   :  { %1090 = vmatprep.mubr.f32.mxu1 %v727_v59 }
 0x1d7   :  { %1091 = vmatmul.mubr.f32.gmra.mxu1 %v726_v58 }
 0x1d8   :  { %1096 = vmatprep.mubr.f32.mxu1 %v729_v9 }
 0x1db   :  { %1097 = vmatmul.mubr.f32.gmra.mxu1 %v728_v60 }
 0x1dc   :  { %1102 = vmatprep.mubr.f32.mxu1 %v731_v36 }
 0x1df   :  { %1103 = vmatmul.mubr.f32.gmra.mxu1 %v730_v32 }
 0x1e0   :  { %1108 = vmatprep.mubr.f32.mxu1 %v733_v63 }
 0x1e3   :  { %1109 = vmatmul.mubr.f32.gmra.mxu1 %v732_v7  ;;  %v766_v7 = vpop.permute.xlu1 %765 }
 0x1e4   :  { %1114 = vmatprep.mubr.f32.mxu1 %v735_v52 }
 0x1e7   :  { %1115 = vmatmul.mubr.f32.gmra.mxu1 %v734_v12 }
 0x22b   :  { %v2129_v54 = vpop.f32.mrf.mxu1 }
 0x22d   :  { %v2131_v47 = vpop.f32.mrf.mxu1 }
 0x22f   :  { %v2133_v29 = vpop.f32.mrf.mxu1 }
 0x231   :  { %v2135_v38 = vpop.f32.mrf.mxu1 }
 0x233   :  { %v2137_v4 = vpop.f32.mrf.mxu1 }
 0x235   :  { %v2139_v11 = vpop.f32.mrf.mxu1 }
 0x237   :  { %v2141_v49 = vpop.f32.mrf.mxu1 }
 0x239   :  { %v2143_v53 = vpop.f32.mrf.mxu1 }
 0x23b   :  { %v2145_v45 = vpop.f32.mrf.mxu1 }
 0x23d   :  { %v2147_v8 = vpop.f32.mrf.mxu1 }
 0x23f   :  { %v2149_v43 = vpop.f32.mrf.mxu1 }
 0x241   :  { %v2151_v46 = vpop.f32.mrf.mxu1 }
 0x243   :  { %v2153_v6 = vpop.f32.mrf.mxu1 }
 0x245   :  { %v2155_v57 = vpop.f32.mrf.mxu1 }
 0x247   :  { %v2157_v14 = vpop.f32.mrf.mxu1 }
 0x249   :  { %v2162_v56 = vpop.f32.mrf.mxu1 }
 0x24b   :  { %v2170_v62 = vpop.f32.mrf.mxu1 }
 0x24d   :  { %v2173_v61 = vpop.f32.mrf.mxu1 }
 0x24f   :  { %v984_v44 = vpop.f32.mrf.mxu1 }
 0x251   :  { %v986_v15 = vpop.f32.mrf.mxu1 }
 0x253   :  { %v990_v31 = vpop.f32.mrf.mxu1 }
 0x255   :  { %v992_v24 = vpop.f32.mrf.mxu1 }
 0x257   :  { %v996_v5 = vpop.f32.mrf.mxu1 }
 0x258   :  { %v997_v37 = vadd.f32 %v996_v5, %v782_v18  ;;  %v758_v5 = vpop.permute.xlu1 %757 }
 0x259   :  { %v998_v48 = vpop.f32.mrf.mxu1 }
 0x25a   :  { %v999_v52 = vadd.f32 %v998_v48, %v782_v18  ;;  %v985_v48 = vadd.f32 %v984_v44, %v774_v41  ;;  %v981_v18 = vadd.f32 %v2173_v61, %v770_v50  ;;  %v973_v44 = vadd.f32 %v2157_v14, %v766_v7 }
 0x25b   :  { %v1002_v27 = vpop.f32.mrf.mxu1  ;;  %v961_v14 = vadd.f32 %v2149_v43, %v758_v5 }
 0x25c   :  { %v1003_v36 = vadd.f32 %v1002_v27, %v786_v35 }
 0x25d   :  { %v1004_v39 = vpop.f32.mrf.mxu1 }
 0x25e   :  { %v1005_v9 = vadd.f32 %v1004_v39, %v786_v35  ;;  %v991_v39 = vadd.f32 %v990_v31, %v778_v30  ;;  %v987_v35 = vadd.f32 %v986_v15, %v774_v41  ;;  %v975_v15 = vadd.f32 %v2162_v56, %v766_v7 }
 0x25f   :  { %v1008_v28 = vpop.f32.mrf.mxu1  ;;  %v1139_v41 = vmax.f32 %v985_v48, 0.0  ;;  %v963_v56 = vadd.f32 %v2151_v46, %v758_v5 }
 0x260   :  { %v1009_v51 = vadd.f32 %v1008_v28, %v790_v25  ;;  %v1145_v28 = vmax.f32 %v1003_v36, 0.0  ;;  %v1141_v31 = vmax.f32 %v991_v39, 0.0 }
 0x261   :  { %v1010_v1 = vpop.f32.mrf.mxu1  ;;  %v1132_v7 = vmax.f32 %v963_v56, 0.0 }
 0x262   :  { %v1011_v21 = vadd.f32 %v1010_v1, %v790_v25  ;;  %v1147_v2 = vmax.f32 %v1009_v51, 0.0  ;;  %v1146_v25 = vmax.f32 %v1005_v9, 0.0  ;;  %v1144_v1 = vmax.f32 %v999_v52, 0.0 }
 0x263   :  { %v1014_v26 = vpop.f32.mrf.mxu1  ;;  %v1135_v51 = vmax.f32 %v973_v44, 0.0  ;;  %v1131_v52 = vmax.f32 %v961_v14, 0.0 }
 0x264   :  { %v1015_v16 = vadd.f32 %v1014_v26, %v794_v33  ;;  %v1148_v12 = vmax.f32 %v1011_v21, 0.0  ;;  %v1143_v26 = vmax.f32 %v997_v37, 0.0  ;;  %v750_v21 = vpop.permute.xlu1 %749 }
 0x265   :  { %v1016_v22 = vpop.f32.mrf.mxu1  ;;  %v951_v46 = vadd.f32 %v2143_v53, %v750_v21  ;;  %v949_v43 = vadd.f32 %v2141_v49, %v750_v21 }
 0x266   :  { %v1017_v20 = vadd.f32 %v1016_v22, %v794_v33  ;;  %v1149_v32 = vmax.f32 %v1015_v16, 0.0  ;;  %v762_v33 = vpop.permute.xlu0 %761 }
 0x267   :  { %v1020_v19 = vpop.f32.mrf.mxu1  ;;  %v969_v61 = vadd.f32 %v2155_v57, %v762_v33  ;;  %v1128_v39 = vmax.f32 %v951_v46, 0.0 }
 0x268   :  { %v1021_v42 = vadd.f32 %v1020_v19, %v798_v17  ;;  %v1150_v60 = vmax.f32 %v1017_v20, 0.0  ;;  %v742_v37 = vpop.permute.xlu1 %741 }
 0x269   :  { %v1022_v23 = vpop.f32.mrf.mxu1  ;;  %v937_v49 = vadd.f32 %v2133_v29, %v742_v37 }
 0x26a   :  { %v1023_v0 = vadd.f32 %v1022_v23, %v798_v17  ;;  %v1151_v59 = vmax.f32 %v1021_v42, 0.0  ;;  %v993_v17 = vadd.f32 %v992_v24, %v778_v30  ;;  %v979_v24 = vadd.f32 %v2170_v62, %v770_v50  ;;  %v754_v42 = vpop.permute.xlu0 %753 }
 0x26b   :  { %v2175_v13 = vpop.f32.mrf.mxu1  ;;  %v1140_v23 = vmax.f32 %v987_v35, 0.0  ;;  %v967_v62 = vadd.f32 %v2153_v6, %v762_v33  ;;  %v957_v9 = vadd.f32 %v2147_v8, %v754_v42  ;;  %v955_v6 = vadd.f32 %v2145_v45, %v754_v42 }
 0x26c   :  { %v1152_v3 = vmax.f32 %v1023_v0, 0.0  ;;  %v1142_v19 = vmax.f32 %v993_v17, 0.0  ;;  %v1138_v0 = vmax.f32 %v981_v18, 0.0  ;;  %v1137_v16 = vmax.f32 %v979_v24, 0.0  ;;  %v862_v44 = vpop.permute.xlu1 %861 }
 0x26d   :  { %v2177_v58 = vpop.f32.mrf.mxu1  ;;  %v1133_v36 = vmax.f32 %v967_v62, 0.0  ;;  %v1129_v33 = vmax.f32 %v955_v6, 0.0 }
 0x26e   :  { %1207 = vmatprep.subr.mxu0 %v1152_v3  ;;  %v1136_v3 = vmax.f32 %v975_v15, 0.0  ;;  %v746_v57 = vpop.permute.xlu0 %745 }
 0x26f   :  { %v2179_v63 = vpop.f32.mrf.mxu1  ;;  %1208 = vmatpush1.msra.mxu0 %v1151_v59  ;;  %v945_v8 = vadd.f32 %v2139_v11, %v746_v57  ;;  %v943_v45 = vadd.f32 %v2137_v4, %v746_v57 }
 0x270   :  { %1209 = vmatprep.subr.mxu0 %v1150_v60  ;;  %v1134_v60 = vmax.f32 %v969_v61, 0.0 }
 0x271   :  { %v2181_v10 = vpop.f32.mrf.mxu1  ;;  %1210 = vmatpush1.msra.mxu0 %v1149_v32  ;;  %v1125_v48 = vmax.f32 %v943_v45, 0.0 }
 0x272   :  { %1211 = vmatprep.subr.mxu0 %v1148_v12  ;;  %v738_v53 = vpop.permute.xlu0 %737 }
 0x273   :  { %v2183_v27 = vpop.f32.mrf.mxu1  ;;  %1212 = vmatpush1.msra.mxu0 %v1147_v2  ;;  %v1130_v2 = vmax.f32 %v957_v9, 0.0  ;;  %v933_v11 = vadd.f32 %v2131_v47, %v738_v53  ;;  %v931_v4 = vadd.f32 %v2129_v54, %v738_v53 }
 0x274   :  { %1213 = vmatprep.subr.mxu0 %v1146_v25  ;;  %v939_v25 = vadd.f32 %v2135_v38, %v742_v37  ;;  %v1123_v38 = vmax.f32 %v937_v49, 0.0 }
 0x275   :  { %v2185_v22 = vpop.f32.mrf.mxu1  ;;  %1214 = vmatpush1.msra.mxu0 %v1145_v28  ;;  %v1127_v28 = vmax.f32 %v949_v43, 0.0  ;;  %v1122_v29 = vmax.f32 %v933_v11, 0.0 }
 0x276   :  { %1215 = vmatprep.subr.mxu0 %v1144_v1  ;;  %v1126_v1 = vmax.f32 %v945_v8, 0.0  ;;  %v1124_v5 = vmax.f32 %v939_v25, 0.0  ;;  %v858_v61 = vpop.permute.xlu0 %857 }
 0x277   :  { %v2189_v30 = vpop.f32.mrf.mxu1  ;;  %1216 = vmatpush1.msra.mxu0 %v1143_v26 }
 0x278   :  { %1217 = vmatprep.subr.mxu0 %v1142_v19  ;;  %v1121_v19 = vmax.f32 %v931_v4, 0.0 }
 0x279   :  { %v2193_v20 = vpop.f32.mrf.mxu1  ;;  %1218 = vmatpush1.msra.mxu0 %v1141_v31 }
 0x27a   :  { %1219 = vmatprep.subr.mxu0 %v1140_v23  ;;  %v850_v56 = vpop.permute.xlu0 %849 }
 0x27b   :  { %v2197_v50 = vpop.f32.mrf.mxu1  ;;  %1220 = vmatpush1.msra.mxu0 %v1139_v41 }
 0x27c   :  { %1221 = vmatprep.subr.mxu0 %v1138_v0 }
 0x27d   :  { %v2201_v59 = vpop.f32.mrf.mxu1  ;;  %1222 = vmatpush1.msra.mxu0 %v1137_v16  ;;  %v854_v16 = vpop.permute.xlu1 %853 }
 0x27e   :  { %1223 = vmatprep.subr.mxu0 %v1136_v3  ;;  %v842_v9 = vpop.permute.xlu0 %841 }
 0x27f   :  { %v2205_v32 = vpop.f32.mrf.mxu1  ;;  %1224 = vmatpush1.msra.mxu0 %v1135_v51 }
 0x280   :  { %1225 = vmatprep.subr.mxu0 %v1134_v60 }
 0x281   :  { %v2209_v12 = vpop.f32.mrf.mxu1  ;;  %1226 = vmatpush1.msra.mxu0 %v1133_v36  ;;  %v846_v51 = vpop.permute.xlu1 %845 }
 0x282   :  { %1227 = vmatprep.subr.mxu0 %v1132_v7  ;;  %v834_v37 = vpop.permute.xlu0 %833 }
 0x283   :  { %v2213_v17 = vpop.f32.mrf.mxu1  ;;  %1228 = vmatpush1.msra.mxu0 %v1131_v52 }
 0x284   :  { %1229 = vmatprep.subr.mxu0 %v1130_v2 }
 0x285   :  { %v2217_v35 = vpop.f32.mrf.mxu1  ;;  %1230 = vmatpush1.msra.mxu0 %v1129_v33  ;;  %v838_v46 = vpop.permute.xlu1 %837 }
 0x286   :  { %1231 = vmatprep.subr.mxu0 %v1128_v39 }
 0x287   :  { %v2221_v26 = vpop.f32.mrf.mxu1  ;;  %1232 = vmatpush1.msra.mxu0 %v1127_v28 }
 0x288   :  { %1233 = vmatprep.subr.mxu0 %v1126_v1 }
 0x289   :  { %v2223_v18 = vpop.f32.mrf.mxu1  ;;  %1234 = vmatpush1.msra.mxu0 %v1125_v48  ;;  %v830_v28 = vpop.permute.xlu1 %829 }
 0x28a   :  { %1235 = vmatprep.subr.mxu0 %v1124_v5  ;;  %v826_v5 = vpop.permute.xlu0 %825 }
 0x28b   :  { %v2225_v24 = vpop.f32.mrf.mxu1  ;;  %1236 = vmatpush1.msra.mxu0 %v1123_v38 }
 0x28c   :  { %1237 = vmatprep.subr.mxu0 %v1122_v29 }
 0x28d   :  { %v1076_v47 = vpop.f32.mrf.mxu1  ;;  %1238 = vmatpush1.msra.mxu0 %v1121_v19 }
 0x28f   :  { %v1080_v54 = vpop.f32.mrf.mxu1 }
 0x291   :  { %v1082_v31 = vpop.f32.mrf.mxu1 }
 0x293   :  { %v1086_v42 = vpop.f32.mrf.mxu1 }
 0x294   :  { %v1087_v19 = vadd.f32 %v1086_v42, %v842_v9 }
 0x295   :  { %v1088_v15 = vpop.f32.mrf.mxu1 }
 0x296   :  { %v1089_v38 = vadd.f32 %v1088_v15, %v842_v9  ;;  %v818_v15 = vpop.permute.xlu0 %817 }
 0x297   :  { %v1092_v23 = vpop.f32.mrf.mxu1 }
 0x298   :  { %v1093_v4 = vadd.f32 %v1092_v23, %v846_v51  ;;  %v1075_v23 = vadd.f32 %v2225_v24, %v834_v37 }
 0x299   :  { %v1094_v41 = vpop.f32.mrf.mxu1 }
 0x29a   :  { %v1095_v11 = vadd.f32 %v1094_v41, %v846_v51  ;;  %v1077_v41 = vadd.f32 %v1076_v47, %v834_v37  ;;  %v1063_v47 = vadd.f32 %v2213_v17, %v826_v5  ;;  %v1169_v9 = vmax.f32 %v1075_v23, 0.0 }
 0x29b   :  { %v1098_v0 = vpop.f32.mrf.mxu1 }
 0x29c   :  { %v1099_v39 = vadd.f32 %v1098_v0, %v850_v56  ;;  %v1081_v0 = vadd.f32 %v1080_v54, %v838_v46  ;;  %v1065_v54 = vadd.f32 %v2217_v35, %v826_v5  ;;  %v1051_v35 = vadd.f32 %v2197_v50, %v818_v15 }
 0x29d   :  { %v1100_v62 = vpop.f32.mrf.mxu1 }
 0x29e   :  { %v1101_v53 = vadd.f32 %v1100_v62, %v850_v56  ;;  %v1176_v62 = vmax.f32 %v1095_v11, 0.0  ;;  %v1174_v56 = vmax.f32 %v1089_v38, 0.0  ;;  %v1171_v51 = vmax.f32 %v1081_v0, 0.0 }
 0x29f   :  { %v1104_v21 = vpop.f32.mrf.mxu1 }
 0x2a0   :  { %v1105_v45 = vadd.f32 %v1104_v21, %v854_v16  ;;  %v1178_v29 = vmax.f32 %v1101_v53, 0.0  ;;  %v822_v21 = vpop.permute.xlu1 %821 }
 0x2a1   :  { %v1106_v3 = vpop.f32.mrf.mxu1 }
 0x2a2   :  { %v1107_v8 = vadd.f32 %v1106_v3, %v854_v16  ;;  %v1179_v48 = vmax.f32 %v1105_v45, 0.0  ;;  %v1175_v16 = vmax.f32 %v1093_v4, 0.0  ;;  %v1173_v3 = vmax.f32 %v1087_v19, 0.0 }
 0x2a3   :  { %v1110_v14 = vpop.f32.mrf.mxu1  ;;  %v1161_v45 = vmax.f32 %v1051_v35, 0.0 }
 0x2a4   :  { %v1111_v52 = vadd.f32 %v1110_v14, %v858_v61  ;;  %v1180_v1 = vmax.f32 %v1107_v8, 0.0  ;;  %v1071_v14 = vadd.f32 %v2223_v18, %v830_v28  ;;  %v814_v24 = vpop.permute.xlu1 %813  ;;  %v1057_v18 = vadd.f32 %v2205_v32, %v822_v21 }
 0x2a5   :  { %v1112_v57 = vpop.f32.mrf.mxu1  ;;  %v1047_v17 = vadd.f32 %v2193_v20, %v814_v24 }
 0x2a6   :  { %v1113_v7 = vadd.f32 %v1112_v57, %v858_v61  ;;  %v1181_v49 = vmax.f32 %v1111_v52, 0.0  ;;  %v1083_v61 = vadd.f32 %v1082_v31, %v838_v46  ;;  %v1069_v31 = vadd.f32 %v2221_v26, %v830_v28  ;;  %v810_v26 = vpop.permute.xlu0 %809 }
 0x2a7   :  { %v1116_v60 = vpop.f32.mrf.mxu1  ;;  %v1170_v57 = vmax.f32 %v1077_v41, 0.0  ;;  %v1053_v46 = vadd.f32 %v2201_v59, %v818_v15  ;;  %v1163_v37 = vmax.f32 %v1057_v18, 0.0  ;;  %v1041_v8 = vadd.f32 %v2185_v22, %v810_v26 }
 0x2a8   :  { %v1117_v6 = vadd.f32 %v1116_v60, %v862_v44  ;;  %v1182_v25 = vmax.f32 %v1113_v7, 0.0  ;;  %v1172_v42 = vmax.f32 %v1083_v61, 0.0  ;;  %v1059_v60 = vadd.f32 %v2209_v12, %v822_v21  ;;  %v806_v32 = vpop.permute.xlu1 %805 }
 0x2a9   :  { %v1118_v36 = vpop.f32.mrf.mxu1  ;;  %v1166_v7 = vmax.f32 %v1065_v54, 0.0  ;;  %v1045_v12 = vadd.f32 %v2189_v30, %v814_v24  ;;  %v1039_v59 = vadd.f32 %v2183_v27, %v810_v26  ;;  %v1160_v53 = vmax.f32 %v1047_v17, 0.0 }
 0x2aa   :  { %v1119_v43 = vadd.f32 %v1118_v36, %v862_v44  ;;  %v1183_v33 = vmax.f32 %v1117_v6, 0.0  ;;  %v1177_v44 = vmax.f32 %v1099_v39, 0.0  ;;  %v1168_v6 = vmax.f32 %v1071_v14, 0.0  ;;  %v802_v50 = vpop.permute.xlu0 %801 }
 0x2ab   :  { %v1167_v36 = vmax.f32 %v1069_v31, 0.0  ;;  %v1164_v52 = vmax.f32 %v1059_v60, 0.0  ;;  %v1033_v20 = vadd.f32 %v2179_v63, %v806_v32  ;;  %v1029_v30 = vadd.f32 %v2177_v58, %v802_v50 }
 0x2ac   :  { %v1184_v2 = vmax.f32 %v1119_v43, 0.0  ;;  %v1165_v43 = vmax.f32 %v1063_v47, 0.0  ;;  %v1158_v39 = vmax.f32 %v1041_v8, 0.0  ;;  %v1194_v22 = vsub.s32 0, %v2160_v55 }
 0x2ad   :  { %v1157_v27 = vmax.f32 %v1039_v59, 0.0  ;;  %v1155_v11 = vmax.f32 %v1033_v20, 0.0  ;;  %v1383_v58 = vmov 1966171168  }
 0x2ae   :  { %1239 = vmatprep.subr.mxu0 %v1184_v2  ;;  %v1162_v2 = vmax.f32 %v1053_v46, 0.0  ;;  %v1200_v63 = vrot.slane %v2168_v34, %v1194_v22  ;;  %v1282_v4 = vunpack.c.l.s4 %v1383_v58 }
 0x2af   :  { %1240 = vmatpush2.msra.mxu0 %v1183_v33  ;;  %v1035_v33 = vadd.f32 %v2181_v10, %v806_v32  ;;  %v1154_v10 = vmax.f32 %v1029_v30, 0.0 }
 0x2b0   :  { %1241 = vmatprep.subr.mxu0 %v1182_v25  ;;  %v1159_v25 = vmax.f32 %v1045_v12, 0.0 }
 0x2b1   :  { %1242 = vmatpush2.msra.mxu0 %v1181_v49  ;;  %v1027_v49 = vadd.f32 %v2175_v13, %v802_v50  ;;  %v1156_v28 = vmax.f32 %v1035_v33, 0.0  ;;  %v1283_v13 = vunpack.c.0.s8 %v1282_v4 }
 0x2b2   :  { %1243 = vmatprep.subr.mxu0 %v1180_v1 }
 0x2b3   :  { %1244 = vmatpush2.msra.mxu0 %v1179_v48  ;;  %v1153_v1 = vmax.f32 %v1027_v49, 0.0  ;;  %v1190_v48 = vpop.permute.xlu1 %1189  ;;  %v1286_v61 = vsub.s32 %v1283_v13, %v2160_v55 }
 0x2b4   :  { %1245 = vmatprep.subr.mxu0 %v1178_v29  ;;  %v1195_v5 = vrot.slane %v1190_v48, %v1194_v22 }
 0x2b5   :  { %1246 = vmatpush2.msra.mxu0 %v1177_v44 }
 0x2b6   :  { %1247 = vmatprep.subr.mxu0 %v1176_v62 }
 0x2b7   :  { %1248 = vmatpush2.msra.mxu0 %v1175_v16 }
 0x2b8   :  { %1249 = vmatprep.subr.mxu0 %v1174_v56 }
 0x2b9   :  { %1250 = vmatpush2.msra.mxu0 %v1173_v3 }
 0x2ba   :  { %1251 = vmatprep.subr.mxu0 %v1172_v42 }
 0x2bb   :  { %1252 = vmatpush2.msra.mxu0 %v1171_v51 }
 0x2bc   :  { %1253 = vmatprep.subr.mxu0 %v1170_v57 }
 0x2bd   :  { %1254 = vmatpush2.msra.mxu0 %v1169_v9 }
 0x2be   :  { %1255 = vmatprep.subr.mxu0 %v1168_v6 }
 0x2bf   :  { %1256 = vmatpush2.msra.mxu0 %v1167_v36 }
 0x2c0   :  { %1257 = vmatprep.subr.mxu0 %v1166_v7 }
 0x2c1   :  { %1258 = vmatpush2.msra.mxu0 %v1165_v43 }
 0x2c2   :  { %1259 = vmatprep.subr.mxu0 %v1164_v52 }
 0x2c3   :  { %1260 = vmatpush2.msra.mxu0 %v1163_v37 }
 0x2c4   :  { %1261 = vmatprep.subr.mxu0 %v1162_v2 }
 0x2c5   :  { %1262 = vmatpush2.msra.mxu0 %v1161_v45 }
 0x2c6   :  { %1263 = vmatprep.subr.mxu0 %v1160_v53 }
 0x2c7   :  { %1264 = vmatpush2.msra.mxu0 %v1159_v25 }
 0x2c8   :  { %1265 = vmatprep.subr.mxu0 %v1158_v39 }
 0x2c9   :  { %1266 = vmatpush2.msra.mxu0 %v1157_v27 }
 0x2ca   :  { %1267 = vmatprep.subr.mxu0 %v1156_v28 }
 0x2cb   :  { %1268 = vmatpush2.msra.mxu0 %v1155_v11 }
 0x2cc   :  { %1269 = vmatprep.subr.mxu0 %v1154_v10 }
 0x2cd   :  { %1270 = vmatpush2.msra.mxu0 %v1153_v1 }
 0x2ce   :  { %1272 = vmatmul.mubr.f32.vlgmr.msra.gmra.mxu0 %v1200_v63 }
 0x38e   :  { %v1273_v38 = vpop.f32.mrf.mxu0 }
 0x38f   :  { %v1274_v19 = vadd.f32 %v1273_v38, %v1195_v5 }
 0x390   :  { %v1275_v29 = vpop.f32.mrf.mxu0 }
 0x391   :  { %v1276_v44 = vadd.f32 %v1275_v29, %v1195_v5 }
 0x393   :  { %v1280_v62 = vcombine.low %v1274_v19, %v1276_v44 }
 0x395   :  { %v1287_v34 = vrot.slane %v1280_v62, %v1286_v61 }
 0x397   :  { %v1294_v0 = vrot.slane %v1287_v34, %v1286_v61 }
 0x399   :  { %1300 = vst.msk [vmem:[#allocation3] sm:$0x3] %vm1298_vm1, %v1294_v0 }
 0x39a   :  { %1369 = shalt.err (!%p1366_p4)
}
 0x39b   :  { %1310 = dma.vmem_to_hbm [thread:$0]  %s1308_s17, 32, %s2257_s6, [#allocation4]  }
 0x39c   :  { %1378 = dma.done.wait [#allocation4], 32  }
 0x39d   :  { %1379 = vsyncadd [#allocation4], 4294967264 }
 0x39e   :  { %1314 = vsyncpa [#allocation4], 1 }

</bundles_post_ra>
